<compile_context>
chip_gen: v7x
topology: tpu7x:2x2x1
jax: 0.10.0
libtpu: 0.0.40
codegen_flags: <defaults>
</compile_context>

<pallas_src>
import functools

import jax
import jax.numpy as jnp
from jax.experimental import pallas as pl
from jax.experimental.pallas import tpu as pltpu

# Hidden sizes fixed by the module definition.
HIDDEN = (1024, 128, 64, 16, 1)
OUT_PAD = 128  # final (folded) layer zero-padded to a lane-dense width


def _mlp_kernel(x_ref,
                w1_ref, b1_ref,
                w2_ref, b2_ref,
                we_ref, be_ref,
                o_ref):
    """Fused forward for one batch tile; all weights resident in VMEM."""
    cd = w1_ref.dtype  # MXU operand dtype (f32 or bf16); accumulation is f32.
    x = x_ref[...]

    # Linear(D, 1024)  (+ Dropout(0.2) == identity at inference)
    h = jnp.dot(x, w1_ref[...], preferred_element_type=jnp.float32) + b1_ref[...]
    # Linear(1024, 128) (+ Dropout(0.2) == identity)
    h = jnp.dot(h.astype(cd), w2_ref[...],
                preferred_element_type=jnp.float32) + b2_ref[...]
    # Dropout(0.2), Linear(128,64), Dropout(0.1), Linear(64,16), Linear(16,1):
    # folded into a single [128, OUT_PAD] weight / [1, OUT_PAD] bias.  Column 0
    # is the real output; remaining columns are zeros (lane-dense store).
    h = jnp.dot(h.astype(cd), we_ref[...],
                preferred_element_type=jnp.float32) + be_ref[...]

    o_ref[...] = h.astype(o_ref.dtype)


def _round_up(v, m):
    return ((v + m - 1) // m) * m


def _choose_batch_tile(batch, batch_tile):
    """MXU-friendly batch tile: multiple of 8, >=2 grid steps when possible."""
    batch_tile = max(8, (batch_tile // 8) * 8)
    if batch > batch_tile:
        return batch_tile
    if batch >= 256:
        # Split into (at least) two grid steps so megacore spans both TCs.
        return _round_up(pl.cdiv(batch, 2), 8)
    # Single block equal to the full batch dim (legal even if not a mult of 8).
    return batch


@functools.partial(jax.jit, static_argnames=("batch_tile", "compute_dtype"))
def mlp_forward(x, params, batch_tile=256, compute_dtype=jnp.bfloat16):
    """x: [B, D].  params: 5 pairs (W[in,out], b[1,out]) matching the module."""
    B, D = x.shape
    out_dtype = x.dtype
    assert len(params) == 5, "expected 5 Linear layers"
    (w1, b1), (w2, b2), (w3, b3), (w4, b4), (w5, b5) = params

    # ---- glue-level precompute (f32, negligible cost) -----------------------
    w_eff = w3 @ w4 @ w5                     # [128, 1]
    b_eff = (b3 @ w4 + b4) @ w5 + b5         # [1, 1]
    w_eff = jnp.pad(w_eff, ((0, 0), (0, OUT_PAD - w_eff.shape[1])))
    b_eff = jnp.pad(b_eff, ((0, 0), (0, OUT_PAD - b_eff.shape[1])))

    # MXU operands (optionally bf16); biases stay f32 so the adds are f32.
    x_c = x.astype(compute_dtype)
    flat = [w1.astype(compute_dtype), b1.astype(jnp.float32),
            w2.astype(compute_dtype), b2.astype(jnp.float32),
            w_eff.astype(compute_dtype), b_eff.astype(jnp.float32)]

    bt = _choose_batch_tile(B, batch_tile)
    grid = (pl.cdiv(B, bt),)   # if bt does not divide B, edge blocks are masked

    # Weights / biases: constant index_map -> resident across the whole grid,
    # Pallas does not re-fetch them between batch tiles.
    def _const_spec(shape):
        return pl.BlockSpec(shape, lambda i: (0, 0))

    in_specs = [pl.BlockSpec((bt, D), lambda i: (i, 0))]
    for a in flat:
        in_specs.append(_const_spec(a.shape))
    out_specs = pl.BlockSpec((bt, OUT_PAD), lambda i: (i, 0))

    # ---- VMEM budget & cost estimate ----------------------------------------
    weight_bytes = sum(a.size * a.dtype.itemsize for a in flat)
    io_bytes = 2 * bt * (D * x_c.dtype.itemsize + OUT_PAD * out_dtype.itemsize)
    act_bytes = bt * (HIDDEN[0] + HIDDEN[1] + OUT_PAD) * 4  # f32 intermediates
    vmem_est = 2 * weight_bytes + io_bytes + act_bytes
    vmem_limit = max(16 << 20, min(int(vmem_est * 1.5) + (8 << 20), 64 << 20))

    flops = 2 * B * (D * HIDDEN[0] + HIDDEN[0] * HIDDEN[1] + HIDDEN[1] * OUT_PAD)
    bytes_accessed = (B * D * x_c.dtype.itemsize + weight_bytes
                      + B * OUT_PAD * out_dtype.itemsize)

    out = pl.pallas_call(
        _mlp_kernel,
        out_shape=jax.ShapeDtypeStruct((B, OUT_PAD), out_dtype),
        grid_spec=pltpu.PrefetchScalarGridSpec(
            num_scalar_prefetch=0,
            grid=grid,
            in_specs=in_specs,
            out_specs=out_specs,
        ),
        compiler_params=pltpu.CompilerParams(
            dimension_semantics=("parallel",),
            vmem_limit_bytes=vmem_limit,
        ),
        cost_estimate=pl.CostEstimate(
            flops=flops, transcendentals=0, bytes_accessed=bytes_accessed),
    )(x_c, *flat)

    return out[:, :1]   # column 0 is the real (unpadded) score


def init_params(key, input_size):
    """Deterministic synthetic parameters matching torch.nn.Linear shapes
    (weights already transposed to [in, out] for `x @ W`)."""
    dims = (input_size,) + HIDDEN
    params = []
    for idx, (din, dout) in enumerate(zip(dims[:-1], dims[1:])):
        kw, kb, key = jax.random.split(jax.random.fold_in(key, idx), 3)
        bound = 1.0 / (din ** 0.5)  # torch Linear default init range
        w = jax.random.uniform(kw, (din, dout), jnp.float32, -bound, bound)
        b = jax.random.uniform(kb, (1, dout), jnp.float32, -bound, bound)
        params.append((w, b))
    return params


def mlp_reference(x, params):
    """Pure-JAX layered reference (dropout == identity at inference)."""
    h = x
    for w, b in params:
        h = h @ w + b
    return h


if __name__ == "__main__":
    key = jax.random.PRNGKey(0)
    kx, kp = jax.random.split(key)

    batch = 256          # small, but enough for a >=2-step grid (megacore)
    input_size = 256     # small synthetic embedding dim (real head uses 768)

    x = jax.random.normal(kx, (batch, input_size), jnp.float32)
    params = init_params(kp, input_size)
    ref = mlp_reference(x, params)
    ref_scale = float(jnp.max(jnp.abs(ref))) + 1e-6

    # f32 MXU path: close parity with the unfolded layered reference.
    out_f32 = jax.block_until_ready(
        mlp_forward(x, params, compute_dtype=jnp.float32))
    assert out_f32.shape == (batch, 1), out_f32.shape
    assert jnp.allclose(out_f32, ref, atol=1e-3, rtol=1e-3), (
        float(jnp.max(jnp.abs(out_f32 - ref))))

    # bf16 MXU operands (f32 accumulation): fast path, looser tolerance.
    out_bf16 = jax.block_until_ready(mlp_forward(x, params))
    assert out_bf16.shape == (batch, 1), out_bf16.shape
    assert float(jnp.max(jnp.abs(out_bf16 - ref))) < max(5e-2, 0.05 * ref_scale)

    # Odd batch size (not a multiple of 8): handled without padding x in HBM.
    x_ragged = x[:200]
    out_r = jax.block_until_ready(
        mlp_forward(x_ragged, params, compute_dtype=jnp.float32))
    assert out_r.shape == (200, 1), out_r.shape
    assert jnp.allclose(out_r, ref[:200], atol=1e-3, rtol=1e-3)

    print("KERNEL_OK")
</pallas_src>

<mosaic_0001>
module attributes {stable_mosaic.version = 11 : i64} {
  func.func @_mlp_kernel(%arg0: i32, %arg1: memref<128x256xf32, #tpu.memory_space<vmem>>, %arg2: memref<256x1024xf32, #tpu.memory_space<vmem>>, %arg3: memref<1x1024xf32, #tpu.memory_space<vmem>>, %arg4: memref<1024x128xf32, #tpu.memory_space<vmem>>, %arg5: memref<1x128xf32, #tpu.memory_space<vmem>>, %arg6: memref<128x128xf32, #tpu.memory_space<vmem>>, %arg7: memref<1x128xf32, #tpu.memory_space<vmem>>, %arg8: memref<128x128xf32, #tpu.memory_space<vmem>>) attributes {dimension_semantics = [#tpu.dimension_semantics<parallel>], iteration_bounds = array<i64: 2>, scalar_prefetch = 0 : i64, scratch_operands = 0 : i64, tpu.core_type = #tpu.core_type<tc>, window_params = [{transform_indices = @transform_0, window_bounds = array<i64: 128, 256>}, {pipeline_mode = #tpu.pipeline_mode<synchronous>, transform_indices = @transform_1, window_bounds = array<i64: 256, 1024>}, {pipeline_mode = #tpu.pipeline_mode<synchronous>, transform_indices = @transform_2, window_bounds = array<i64: 1, 1024>}, {pipeline_mode = #tpu.pipeline_mode<synchronous>, transform_indices = @transform_3, window_bounds = array<i64: 1024, 128>}, {pipeline_mode = #tpu.pipeline_mode<synchronous>, transform_indices = @transform_4, window_bounds = array<i64: 1, 128>}, {pipeline_mode = #tpu.pipeline_mode<synchronous>, transform_indices = @transform_5, window_bounds = array<i64: 128, 128>}, {pipeline_mode = #tpu.pipeline_mode<synchronous>, transform_indices = @transform_6, window_bounds = array<i64: 1, 128>}, {transform_indices = @transform_7, window_bounds = array<i64: 128, 128>}]} {
    %c0 = arith.constant 0 : index
    %c0_0 = arith.constant 0 : index
    %0 = vector.load %arg1[%c0, %c0_0] : memref<128x256xf32, #tpu.memory_space<vmem>>, vector<128x256xf32>
    %c0_1 = arith.constant 0 : index
    %c0_2 = arith.constant 0 : index
    %1 = vector.load %arg2[%c0_1, %c0_2] : memref<256x1024xf32, #tpu.memory_space<vmem>>, vector<256x1024xf32>
    %cst = arith.constant dense<0.000000e+00> : vector<128x1024xf32>
    %2 = tpu.matmul %0, %1, %cst {dimension_numbers = #tpu.dot_dimension_numbers<[1], [0], [0], [1], [0, 0, 1, 1], [], []>} : vector<128x256xf32>, vector<256x1024xf32>, vector<128x1024xf32> -> vector<128x1024xf32>
    %c0_3 = arith.constant 0 : index
    %c0_4 = arith.constant 0 : index
    %3 = vector.load %arg3[%c0_3, %c0_4] : memref<1x1024xf32, #tpu.memory_space<vmem>>, vector<1x1024xf32>
    %4 = vector.broadcast %3 : vector<1x1024xf32> to vector<128x1024xf32>
    %5 = arith.addf %2, %4 : vector<128x1024xf32>
    %c0_5 = arith.constant 0 : index
    %c0_6 = arith.constant 0 : index
    %6 = vector.load %arg4[%c0_5, %c0_6] : memref<1024x128xf32, #tpu.memory_space<vmem>>, vector<1024x128xf32>
    %cst_7 = arith.constant dense<0.000000e+00> : vector<128x128xf32>
    %7 = tpu.matmul %5, %6, %cst_7 {dimension_numbers = #tpu.dot_dimension_numbers<[1], [0], [0], [1], [0, 0, 1, 1], [], []>} : vector<128x1024xf32>, vector<1024x128xf32>, vector<128x128xf32> -> vector<128x128xf32>
    %c0_8 = arith.constant 0 : index
    %c0_9 = arith.constant 0 : index
    %8 = vector.load %arg5[%c0_8, %c0_9] : memref<1x128xf32, #tpu.memory_space<vmem>>, vector<1x128xf32>
    %9 = vector.broadcast %8 : vector<1x128xf32> to vector<128x128xf32>
    %10 = arith.addf %7, %9 : vector<128x128xf32>
    %c0_10 = arith.constant 0 : index
    %c0_11 = arith.constant 0 : index
    %11 = vector.load %arg6[%c0_10, %c0_11] : memref<128x128xf32, #tpu.memory_space<vmem>>, vector<128x128xf32>
    %cst_12 = arith.constant dense<0.000000e+00> : vector<128x128xf32>
    %12 = tpu.matmul %10, %11, %cst_12 {dimension_numbers = #tpu.dot_dimension_numbers<[1], [0], [0], [1], [0, 0, 1, 1], [], []>} : vector<128x128xf32>, vector<128x128xf32>, vector<128x128xf32> -> vector<128x128xf32>
    %c0_13 = arith.constant 0 : index
    %c0_14 = arith.constant 0 : index
    %13 = vector.load %arg7[%c0_13, %c0_14] : memref<1x128xf32, #tpu.memory_space<vmem>>, vector<1x128xf32>
    %14 = vector.broadcast %13 : vector<1x128xf32> to vector<128x128xf32>
    %15 = arith.addf %12, %14 : vector<128x128xf32>
    %c0_15 = arith.constant 0 : index
    %c0_16 = arith.constant 0 : index
    %16 = vector.load %arg8[%c0_15, %c0_16] : memref<128x128xf32, #tpu.memory_space<vmem>>, vector<128x128xf32>
    tpu.vector_store %arg8[%c0_15, %c0_16], %15 {strides = array<i32>} : memref<128x128xf32, #tpu.memory_space<vmem>>, vector<128x128xf32>,
    return
  }
  func.func @transform_0(%arg0: i32) -> (i32, i32) {
    %c0_i32 = arith.constant 0 : i32
    %c0_i32_0 = arith.constant 0 : i32
    return %arg0, %c0_i32 : i32, i32
  }
  func.func @transform_1(%arg0: i32) -> (i32, i32) {
    %c0_i32 = arith.constant 0 : i32
    %c0_i32_0 = arith.constant 0 : i32
    %c0_i32_1 = arith.constant 0 : i32
    return %c0_i32, %c0_i32_0 : i32, i32
  }
  func.func @transform_2(%arg0: i32) -> (i32, i32) {
    %c0_i32 = arith.constant 0 : i32
    %c0_i32_0 = arith.constant 0 : i32
    %c0_i32_1 = arith.constant 0 : i32
    return %c0_i32, %c0_i32_0 : i32, i32
  }
  func.func @transform_3(%arg0: i32) -> (i32, i32) {
    %c0_i32 = arith.constant 0 : i32
    %c0_i32_0 = arith.constant 0 : i32
    %c0_i32_1 = arith.constant 0 : i32
    return %c0_i32, %c0_i32_0 : i32, i32
  }
  func.func @transform_4(%arg0: i32) -> (i32, i32) {
    %c0_i32 = arith.constant 0 : i32
    %c0_i32_0 = arith.constant 0 : i32
    %c0_i32_1 = arith.constant 0 : i32
    return %c0_i32, %c0_i32_0 : i32, i32
  }
  func.func @transform_5(%arg0: i32) -> (i32, i32) {
    %c0_i32 = arith.constant 0 : i32
    %c0_i32_0 = arith.constant 0 : i32
    %c0_i32_1 = arith.constant 0 : i32
    return %c0_i32, %c0_i32_0 : i32, i32
  }
  func.func @transform_6(%arg0: i32) -> (i32, i32) {
    %c0_i32 = arith.constant 0 : i32
    %c0_i32_0 = arith.constant 0 : i32
    %c0_i32_1 = arith.constant 0 : i32
    return %c0_i32, %c0_i32_0 : i32, i32
  }
  func.func @transform_7(%arg0: i32) -> (i32, i32) {
    %c0_i32 = arith.constant 0 : i32
    %c0_i32_0 = arith.constant 0 : i32
    return %arg0, %c0_i32 : i32, i32
  }
}

</mosaic_0001>

<bundles_post_ra>
// kernel: mlp_forward.1
= control target key start
LH: loop header
LB: loop body
LE: loop exit
PB: predicated region body
PF: predicated region fallthrough
CT: control target
= control target key end

     0   :  { %12 = vsyncpa [#allocation3], 0  ;;  %s3908_s0 = inlined_call_operand.vmem [shape: f32[256,256], index: 0, kind: input, shape index: {}]   ;;  %s3909_s1 = inlined_call_operand.hbm [shape: f32[256,1024], index: 1, kind: input, shape index: {}]   ;;  %s3910_s2 = inlined_call_operand.vmem [shape: f32[1,1024], index: 2, kind: input, shape index: {}]   ;;  %s3911_s3 = inlined_call_operand.hbm [shape: f32[1024,128], index: 3, kind: input, shape index: {}]   ;;  %s3912_s4 = inlined_call_operand.vmem [shape: f32[1,128], index: 4, kind: input, shape index: {}]   ;;  %s3913_s5 = inlined_call_operand.vmem [shape: f32[128,128], index: 5, kind: input, shape index: {}]   ;;  %s3914_s6 = inlined_call_operand.vmem [shape: f32[1,128], index: 6, kind: input, shape index: {}]   ;;  %s3915_s7 = inlined_call_operand.vmem [shape: f32[256,128], index: 7, kind: output, shape index: {}]  }
   0x1   :  { %13 = vsyncpa [#allocation5], 0  ;;  %s3276_s24 = smov 0  }
   0x2 LB: > { %s3230_s25 = smov [#allocation2]   ;;  %s2266_s27 = sadd.s32 4294967295, %s3228_s24   ;;  %s3228_s24 = sphi %s3276_s24, %s19_s24  }
   0x3   : > { %s214_s26 = sshll.u32 %s3230_s25, 4  ;;  %p2268_p0 = scmp.ge.s32.totalorder %s3228_s24, 1  ;;  %s215_s26 = int_to_ptr.vmem [resolvable:$true] %s214_s26 }
   0x4   : > { %p202_p1 = scmp.lt.s32.totalorder %s3228_s24, 3  ;;  %p3290_p3 = scmp.eq.s32.totalorder %s2266_s27, 0 }
   0x5   : > { %s3231_s30 = smov [#allocation4]   ;;  %s3158_s12 = scalar_lea.hbm %s3909_s1, 32768 }
   0x6   : > { %p3284_p2 = pnand %p2268_p0, %p202_p1  ;;  %s230_s8 = sshll.u32 %s3231_s30, 4  ;;  %s3302_s8 = int_to_ptr.vmem [resolvable:$true] %s230_s8 }
   0x7   : > { %s3920_s29 = scalar_select %p3290_p3, 1, 0 }
   0x8   : > { %s3919_s28 = scalar_select %p3284_p2, 1, 0 }
   0x9   : > { %p3133_p4 = pneg %p3284_p2  ;;  %p3159_p6 = scmp.ne.s32.totalorder %s3909_s1, %s3158_s12 }
   0xa   : > { %p3165_p10 = scmp.lt.u32.totalorder %s3158_s12, %s3909_s1 }
   0xb   : > { %p3298_p5 = pnand %p3290_p3, %p3133_p4 }
   0xd   : > { %p3160_p7 = pneg %p3298_p5 }
   0xf   : > { %p3161_p8 = pnand %p3160_p7, %p3159_p6 }
  0x11   : > { %p3162_p9 = pneg %p3161_p8 }
  0x13   : > { %p3167_p11 = pnand %p3165_p10, %p3162_p9 }
  0x15   : > { %3170 = shalt.err (!%p3167_p11)
}
  0x16   : > { %s3171_s17 = scalar_lea.vmem %s215_s26, 32768  ;;  %p3179_p1 = scmp.lt.s32.totalorder %s215_s26, %s215_s26 }
  0x17   : > { %p3172_p12 = scmp.ne.s32.totalorder %s215_s26, %s3171_s17  ;;  %p3180_p4 = scmp.lt.s32.totalorder %s3171_s17, %s3171_s17 }
  0x19   : > { %p3174_p13 = pnand %p3172_p12, %p3160_p7  ;;  %p3181_p3 = por %p3180_p4, %p3179_p1 }
  0x1b   : > { %p3175_p0 = pneg %p3174_p13 }
  0x1d   : > { %p3182_p2 = pnand %p3181_p3, %p3175_p0 }
  0x1f   : > { %3185 = shalt.err (!%p3182_p2)
}
  0x20   : > { %s3232_s18 = smov 1024   ;;  %s3233_s19 = smov 64  }
  0x21   : > { %3136 = dma.hbm_to_vmem [thread:$0]  (!%p3298_p5), %s3909_s1, 32768, %s215_s26, [#allocation3], %s3232_s18, %s3232_s18, %s3233_s19  }
  0x22   : > { %s3186_s25 = scalar_lea.hbm %s3911_s3, 16384 }
  0x23   : > { %p3187_p6 = scmp.ne.s32.totalorder %s3911_s3, %s3186_s25  ;;  %p3193_p8 = scmp.lt.u32.totalorder %s3186_s25, %s3911_s3 }
  0x25   : > { %p3189_p2 = pnand %p3187_p6, %p3160_p7 }
  0x27   : > { %p3190_p3 = pneg %p3189_p2 }
  0x29   : > { %p3195_p9 = pnand %p3193_p8, %p3190_p3 }
  0x2b   : > { %3198 = shalt.err (!%p3195_p9)
}
  0x2c   : > { %s3199_s26 = scalar_lea.vmem %s3302_s8, 16384  ;;  %p3207_p13 = scmp.lt.s32.totalorder %s3302_s8, %s3302_s8 }
  0x2d   : > { %p3200_p10 = scmp.ne.s32.totalorder %s3302_s8, %s3199_s26  ;;  %p3208_p0 = scmp.lt.s32.totalorder %s3199_s26, %s3199_s26 }
  0x2f   : > { %p3202_p11 = pnand %p3200_p10, %p3160_p7  ;;  %p3209_p1 = por %p3208_p0, %p3207_p13 }
  0x31   : > { %p3203_p12 = pneg %p3202_p11 }
  0x33   : > { %p3210_p4 = pnand %p3209_p1, %p3203_p12 }
  0x35   : > { %3213 = shalt.err (!%p3210_p4)
}
  0x36   : > { %s3234_s13 = smov 128   ;;  %s3235_s14 = smov 8  }
  0x37   : > { %3139 = dma.hbm_to_vmem [thread:$0]  (!%p3298_p5), %s3911_s3, 16384, %s3302_s8, [#allocation5], %s3234_s13, %s3234_s13, %s3235_s14  }
  0x38   : > { %p3922_p6 = scmp.ne.s32.totalorder %s3919_s28, 0 }
  0x39   : > { %p3923_p7 = scmp.ne.s32.totalorder (!%p3922_p6), %s3920_s29, 0 }
  0x3a   : > { %265 = sbr.rel (%p3922_p6) target bundleno = 911 (0x38f), region = 48 }
  0x41   : > { %3219 = dma.done.wait (%p3923_p7), [#allocation3], 32768  }
  0x42   : > { %3221 = vsyncadd (%p3923_p7), [#allocation3], 4294934528 }
  0x43   : > { %3223 = dma.done.wait (%p3923_p7), [#allocation5], 16384  }
  0x44   : > { %3225 = vsyncadd (%p3923_p7), [#allocation5], 4294950912  ;;  %v348_v0 = vld [vmem:[#allocation2 + $0x8] sm:$0xff]  ;;  %v350_v2 = vld [vmem:[#allocation2 + $0x18] sm:$0xff]  ;;  %s2275_s28 = sshll.u32 %s2266_s27, 4 }
  0x45   : > { %v356_v1 = vld [vmem:[#allocation2 + $0x48] sm:$0xff]  ;;  %v358_v4 = vld [vmem:[#allocation2 + $0x58] sm:$0xff]  ;;  %v347_v5 = vld [vmem:[#allocation2] sm:$0xff]  ;;  %p303_p5 = scmp.lt.s32.totalorder %s2275_s28, 31 }
  0x46   : > { %v2693_v3 = vpack.c.bf16 %v356_v1, %v348_v0  ;;  %v355_v6 = vld [vmem:[#allocation2 + $0x40] sm:$0xff]  ;;  %v2757_v7 = vpack.c.bf16 %v358_v4, %v350_v2  ;;  %v349_v9 = vld [vmem:[#allocation2 + $0x10] sm:$0xff]  ;;  %v364_v11 = vld [vmem:[#allocation2 + $0x88] sm:$0xff] }
  0x47   : > { %v2695_v8 = vpack.c.bf16 %v355_v6, %v347_v5  ;;  %v357_v10 = vld [vmem:[#allocation2 + $0x50] sm:$0xff]  ;;  %v372_v13 = vld [vmem:[#allocation2 + $0xc8] sm:$0xff]  ;;  %v366_v14 = vld [vmem:[#allocation2 + $0x98] sm:$0xff]  ;;  %s3925_s28 = smov (!%p303_p5, %s2275_s28), 31 }
  0x48   : > { %2694 = vmatprep.subr.bf16.mxu0 %v2693_v3  ;;  %v2759_v12 = vpack.c.bf16 %v357_v10, %v349_v9  ;;  %v374_v15 = vld [vmem:[#allocation2 + $0xd8] sm:$0xff]  ;;  %2758 = vmatprep.subr.bf16.mxu1 %v2757_v7  ;;  %v2697_v16 = vpack.c.bf16 %v372_v13, %v364_v11  ;;  %v363_v18 = vld [vmem:[#allocation2 + $0x80] sm:$0xff]  ;;  %v365_v20 = vld [vmem:[#allocation2 + $0x90] sm:$0xff]  ;;  %s2284_s27 = sshll.u32 %s3925_s28, 4  ;;  %s2279_s15 = sshll.u32 %s3925_s28, 3 }
  0x49   : > { %2696 = vmatpush1.bf16.msra.mxu0 %v2695_v8  ;;  %v2761_v17 = vpack.c.bf16 %v374_v15, %v366_v14  ;;  %v371_v19 = vld [vmem:[#allocation2 + $0xc0] sm:$0xff]  ;;  %v373_v22 = vld [vmem:[#allocation2 + $0xd0] sm:$0xff]  ;;  %v380_v23 = vld [vmem:[#allocation2 + $0x108] sm:$0xff]  ;;  %s3370_s9 = scalar_lea.vmem %s3908_s0, %s2284_s27 }
  0x4a   : > { %2760 = vmatpush1.bf16.msra.mxu1 %v2759_v12  ;;  %v2699_v21 = vpack.c.bf16 %v371_v19, %v363_v18  ;;  %v388_v24 = vld [vmem:[#allocation2 + $0x148] sm:$0xff]  ;;  %2698 = vmatprep.subr.bf16.mxu0 %v2697_v16  ;;  %v2763_v25 = vpack.c.bf16 %v373_v22, %v365_v20  ;;  %v382_v27 = vld [vmem:[#allocation2 + $0x118] sm:$0xff]  ;;  %v379_v29 = vld [vmem:[#allocation2 + $0x100] sm:$0xff] }
  0x4b   : > { %2762 = vmatprep.subr.bf16.mxu1 %v2761_v17  ;;  %v2701_v26 = vpack.c.bf16 %v388_v24, %v380_v23  ;;  %v390_v28 = vld [vmem:[#allocation2 + $0x158] sm:$0xff]  ;;  %v387_v31 = vld [vmem:[#allocation2 + $0x140] sm:$0xff]  ;;  %v381_v32 = vld [vmem:[#allocation2 + $0x110] sm:$0xff] }
  0x4c   : > { %v2765_v30 = vpack.c.bf16 %v390_v28, %v382_v27  ;;  %v389_v33 = vld [vmem:[#allocation2 + $0x150] sm:$0xff]  ;;  %v2703_v34 = vpack.c.bf16 %v387_v31, %v379_v29  ;;  %v396_v35 = vld [vmem:[#allocation2 + $0x188] sm:$0xff]  ;;  %v398_v37 = vld [vmem:[#allocation2 + $0x198] sm:$0xff] }
  0x4d   : > { %2700 = vmatpush1.bf16.msra.mxu0 %v2699_v21  ;;  %v404_v36 = vld [vmem:[#allocation2 + $0x1c8] sm:$0xff]  ;;  %v2767_v38 = vpack.c.bf16 %v389_v33, %v381_v32  ;;  %v406_v40 = vld [vmem:[#allocation2 + $0x1d8] sm:$0xff]  ;;  %v395_v41 = vld [vmem:[#allocation2 + $0x180] sm:$0xff] }
  0x4e   : > { %2764 = vmatpush1.bf16.msra.mxu1 %v2763_v25  ;;  %2702 = vmatprep.subr.bf16.mxu0 %v2701_v26  ;;  %v2705_v39 = vpack.c.bf16 %v404_v36, %v396_v35  ;;  %v403_v42 = vld [vmem:[#allocation2 + $0x1c0] sm:$0xff]  ;;  %v2769_v43 = vpack.c.bf16 %v406_v40, %v398_v37  ;;  %v397_v44 = vld [vmem:[#allocation2 + $0x190] sm:$0xff]  ;;  %v412_v46 = vld [vmem:[#allocation2 + $0x208] sm:$0xff] }
  0x4f   : > { %2766 = vmatprep.subr.bf16.mxu1 %v2765_v30  ;;  %v405_v45 = vld [vmem:[#allocation2 + $0x1d0] sm:$0xff]  ;;  %v420_v47 = vld [vmem:[#allocation2 + $0x248] sm:$0xff]  ;;  %v414_v48 = vld [vmem:[#allocation2 + $0x218] sm:$0xff]  ;;  %v2707_v50 = vpack.c.bf16 %v403_v42, %v395_v41 }
  0x50   : > { %v422_v49 = vld [vmem:[#allocation2 + $0x258] sm:$0xff]  ;;  %v2771_v51 = vpack.c.bf16 %v405_v45, %v397_v44  ;;  %v2709_v52 = vpack.c.bf16 %v420_v47, %v412_v46  ;;  %v411_v53 = vld [vmem:[#allocation2 + $0x200] sm:$0xff]  ;;  %v413_v55 = vld [vmem:[#allocation2 + $0x210] sm:$0xff] }
  0x51   : > { %2704 = vmatpush1.bf16.msra.mxu0 %v2703_v34  ;;  %v419_v54 = vld [vmem:[#allocation2 + $0x240] sm:$0xff]  ;;  %v2773_v56 = vpack.c.bf16 %v422_v49, %v414_v48  ;;  %v421_v57 = vld [vmem:[#allocation2 + $0x250] sm:$0xff]  ;;  %v428_v58 = vld [vmem:[#allocation2 + $0x288] sm:$0xff] }
  0x52   : > { %2768 = vmatpush1.bf16.msra.mxu1 %v2767_v38  ;;  %2706 = vmatprep.subr.bf16.mxu0 %v2705_v39  ;;  %v436_v59 = vld [vmem:[#allocation2 + $0x2c8] sm:$0xff]  ;;  %v430_v60 = vld [vmem:[#allocation2 + $0x298] sm:$0xff]  ;;  %v2711_v62 = vpack.c.bf16 %v419_v54, %v411_v53  ;;  %v2775_v63 = vpack.c.bf16 %v421_v57, %v413_v55  ;;  %v427_v1 = vld [vmem:[#allocation2 + $0x280] sm:$0xff] }
  0x53   : > { %2770 = vmatprep.subr.bf16.mxu1 %v2769_v43  ;;  %v438_v61 = vld [vmem:[#allocation2 + $0x2d8] sm:$0xff]  ;;  %v2713_v0 = vpack.c.bf16 %v436_v59, %v428_v58  ;;  %v435_v2 = vld [vmem:[#allocation2 + $0x2c0] sm:$0xff]  ;;  %v429_v3 = vld [vmem:[#allocation2 + $0x290] sm:$0xff] }
  0x54   : > { %v2777_v4 = vpack.c.bf16 %v438_v61, %v430_v60  ;;  %v437_v5 = vld [vmem:[#allocation2 + $0x2d0] sm:$0xff]  ;;  %v444_v6 = vld [vmem:[#allocation2 + $0x308] sm:$0xff]  ;;  %v446_v8 = vld [vmem:[#allocation2 + $0x318] sm:$0xff]  ;;  %v2715_v10 = vpack.c.bf16 %v435_v2, %v427_v1 }
  0x55   : > { %2708 = vmatpush1.bf16.msra.mxu0 %v2707_v50  ;;  %v452_v7 = vld [vmem:[#allocation2 + $0x348] sm:$0xff]  ;;  %v454_v9 = vld [vmem:[#allocation2 + $0x358] sm:$0xff]  ;;  %v2779_v11 = vpack.c.bf16 %v437_v5, %v429_v3  ;;  %v443_v13 = vld [vmem:[#allocation2 + $0x300] sm:$0xff] }
  0x56   : > { %2772 = vmatpush1.bf16.msra.mxu1 %v2771_v51  ;;  %2710 = vmatprep.subr.bf16.mxu0 %v2709_v52  ;;  %v2717_v12 = vpack.c.bf16 %v452_v7, %v444_v6  ;;  %v451_v14 = vld [vmem:[#allocation2 + $0x340] sm:$0xff]  ;;  %v445_v15 = vld [vmem:[#allocation2 + $0x310] sm:$0xff]  ;;  %v2781_v16 = vpack.c.bf16 %v454_v9, %v446_v8  ;;  %v460_v18 = vld [vmem:[#allocation2 + $0x388] sm:$0xff] }
  0x57   : > { %2774 = vmatprep.subr.bf16.mxu1 %v2773_v56  ;;  %v453_v17 = vld [vmem:[#allocation2 + $0x350] sm:$0xff]  ;;  %v468_v19 = vld [vmem:[#allocation2 + $0x3c8] sm:$0xff]  ;;  %v462_v20 = vld [vmem:[#allocation2 + $0x398] sm:$0xff]  ;;  %v2719_v22 = vpack.c.bf16 %v451_v14, %v443_v13 }
  0x58   : > { %v470_v21 = vld [vmem:[#allocation2 + $0x3d8] sm:$0xff]  ;;  %v2783_v23 = vpack.c.bf16 %v453_v17, %v445_v15  ;;  %v2721_v24 = vpack.c.bf16 %v468_v19, %v460_v18  ;;  %v459_v25 = vld [vmem:[#allocation2 + $0x380] sm:$0xff]  ;;  %v461_v27 = vld [vmem:[#allocation2 + $0x390] sm:$0xff] }
  0x59   : > { %2712 = vmatpush1.bf16.msra.mxu0 %v2711_v62  ;;  %v467_v26 = vld [vmem:[#allocation2 + $0x3c0] sm:$0xff]  ;;  %v2785_v28 = vpack.c.bf16 %v470_v21, %v462_v20  ;;  %v469_v29 = vld [vmem:[#allocation2 + $0x3d0] sm:$0xff]  ;;  %v476_v30 = vld [vmem:[#allocation2 + $0x408] sm:$0xff] }
  0x5a   : > { %2776 = vmatpush1.bf16.msra.mxu1 %v2775_v63  ;;  %2714 = vmatprep.subr.bf16.mxu0 %v2713_v0  ;;  %v484_v31 = vld [vmem:[#allocation2 + $0x448] sm:$0xff]  ;;  %v478_v32 = vld [vmem:[#allocation2 + $0x418] sm:$0xff]  ;;  %v2723_v34 = vpack.c.bf16 %v467_v26, %v459_v25  ;;  %v2787_v35 = vpack.c.bf16 %v469_v29, %v461_v27  ;;  %v475_v37 = vld [vmem:[#allocation2 + $0x400] sm:$0xff] }
  0x5b   : > { %2778 = vmatprep.subr.bf16.mxu1 %v2777_v4  ;;  %v486_v33 = vld [vmem:[#allocation2 + $0x458] sm:$0xff]  ;;  %v2725_v36 = vpack.c.bf16 %v484_v31, %v476_v30  ;;  %v483_v38 = vld [vmem:[#allocation2 + $0x440] sm:$0xff]  ;;  %v477_v39 = vld [vmem:[#allocation2 + $0x410] sm:$0xff] }
  0x5c   : > { %v2789_v40 = vpack.c.bf16 %v486_v33, %v478_v32  ;;  %v485_v41 = vld [vmem:[#allocation2 + $0x450] sm:$0xff]  ;;  %v492_v42 = vld [vmem:[#allocation2 + $0x488] sm:$0xff]  ;;  %v494_v44 = vld [vmem:[#allocation2 + $0x498] sm:$0xff]  ;;  %v2727_v46 = vpack.c.bf16 %v483_v38, %v475_v37 }
  0x5d   : > { %2716 = vmatpush1.bf16.msra.mxu0 %v2715_v10  ;;  %v500_v43 = vld [vmem:[#allocation2 + $0x4c8] sm:$0xff]  ;;  %v502_v45 = vld [vmem:[#allocation2 + $0x4d8] sm:$0xff]  ;;  %v2791_v47 = vpack.c.bf16 %v485_v41, %v477_v39  ;;  %v491_v49 = vld [vmem:[#allocation2 + $0x480] sm:$0xff] }
  0x5e   : > { %2780 = vmatpush1.bf16.msra.mxu1 %v2779_v11  ;;  %2718 = vmatprep.subr.bf16.mxu0 %v2717_v12  ;;  %v2729_v48 = vpack.c.bf16 %v500_v43, %v492_v42  ;;  %v499_v50 = vld [vmem:[#allocation2 + $0x4c0] sm:$0xff]  ;;  %v493_v51 = vld [vmem:[#allocation2 + $0x490] sm:$0xff]  ;;  %v2793_v52 = vpack.c.bf16 %v502_v45, %v494_v44  ;;  %v508_v54 = vld [vmem:[#allocation2 + $0x508] sm:$0xff] }
  0x5f   : > { %2782 = vmatprep.subr.bf16.mxu1 %v2781_v16  ;;  %v501_v53 = vld [vmem:[#allocation2 + $0x4d0] sm:$0xff]  ;;  %v516_v55 = vld [vmem:[#allocation2 + $0x548] sm:$0xff]  ;;  %v510_v56 = vld [vmem:[#allocation2 + $0x518] sm:$0xff]  ;;  %v2731_v58 = vpack.c.bf16 %v499_v50, %v491_v49 }
  0x60   : > { %v518_v57 = vld [vmem:[#allocation2 + $0x558] sm:$0xff]  ;;  %v2795_v59 = vpack.c.bf16 %v501_v53, %v493_v51  ;;  %v2733_v60 = vpack.c.bf16 %v516_v55, %v508_v54  ;;  %v507_v61 = vld [vmem:[#allocation2 + $0x500] sm:$0xff]  ;;  %v509_v63 = vld [vmem:[#allocation2 + $0x510] sm:$0xff] }
  0x61   : > { %2720 = vmatpush1.bf16.msra.mxu0 %v2719_v22  ;;  %v515_v62 = vld [vmem:[#allocation2 + $0x540] sm:$0xff]  ;;  %v2797_v0 = vpack.c.bf16 %v518_v57, %v510_v56  ;;  %v517_v1 = vld [vmem:[#allocation2 + $0x550] sm:$0xff]  ;;  %v524_v2 = vld [vmem:[#allocation2 + $0x588] sm:$0xff] }
  0x62   : > { %2784 = vmatpush1.bf16.msra.mxu1 %v2783_v23  ;;  %2722 = vmatprep.subr.bf16.mxu0 %v2721_v24  ;;  %v532_v3 = vld [vmem:[#allocation2 + $0x5c8] sm:$0xff]  ;;  %v526_v4 = vld [vmem:[#allocation2 + $0x598] sm:$0xff]  ;;  %v2735_v6 = vpack.c.bf16 %v515_v62, %v507_v61  ;;  %v523_v7 = vld [vmem:[#allocation2 + $0x580] sm:$0xff]  ;;  %v2799_v8 = vpack.c.bf16 %v517_v1, %v509_v63 }
  0x63   : > { %2786 = vmatprep.subr.bf16.mxu1 %v2785_v28  ;;  %v534_v5 = vld [vmem:[#allocation2 + $0x5d8] sm:$0xff]  ;;  %v2737_v9 = vpack.c.bf16 %v532_v3, %v524_v2  ;;  %v531_v10 = vld [vmem:[#allocation2 + $0x5c0] sm:$0xff]  ;;  %v525_v11 = vld [vmem:[#allocation2 + $0x590] sm:$0xff] }
  0x64   : > { %v533_v12 = vld [vmem:[#allocation2 + $0x5d0] sm:$0xff]  ;;  %v2801_v13 = vpack.c.bf16 %v534_v5, %v526_v4  ;;  %v540_v14 = vld [vmem:[#allocation2 + $0x608] sm:$0xff]  ;;  %v542_v17 = vld [vmem:[#allocation2 + $0x618] sm:$0xff]  ;;  %v2739_v19 = vpack.c.bf16 %v531_v10, %v523_v7 }
  0x65   : > { %2724 = vmatpush1.bf16.msra.mxu0 %v2723_v34  ;;  %v548_v15 = vld [vmem:[#allocation2 + $0x648] sm:$0xff]  ;;  %v550_v18 = vld [vmem:[#allocation2 + $0x658] sm:$0xff]  ;;  %v2803_v20 = vpack.c.bf16 %v533_v12, %v525_v11  ;;  %v539_v22 = vld [vmem:[#allocation2 + $0x600] sm:$0xff] }
  0x66   : > { %2788 = vmatpush1.bf16.msra.mxu1 %v2787_v35  ;;  %2726 = vmatprep.subr.bf16.mxu0 %v2725_v36  ;;  %v3373_v16 = vld [vmem:[%s3370_s9 + $0x8] sm:$0xff]  ;;  %v2741_v21 = vpack.c.bf16 %v548_v15, %v540_v14  ;;  %v547_v23 = vld [vmem:[#allocation2 + $0x640] sm:$0xff]  ;;  %v541_v24 = vld [vmem:[#allocation2 + $0x610] sm:$0xff]  ;;  %v2805_v25 = vpack.c.bf16 %v550_v18, %v542_v17 }
  0x67   : > { %2790 = vmatprep.subr.bf16.mxu1 %v2789_v40  ;;  %709 = vmatprep.mubr.f32.mxu0 %v3373_v16  ;;  %v549_v26 = vld [vmem:[#allocation2 + $0x650] sm:$0xff]  ;;  %v556_v27 = vld [vmem:[#allocation2 + $0x688] sm:$0xff]  ;;  %v558_v29 = vld [vmem:[#allocation2 + $0x698] sm:$0xff]  ;;  %v2743_v31 = vpack.c.bf16 %v547_v23, %v539_v22 }
  0x68   : > { %870 = vmatprep.mubr.f32.mxu1 %v3373_v16  ;;  %v564_v28 = vld [vmem:[#allocation2 + $0x6c8] sm:$0xff]  ;;  %v566_v30 = vld [vmem:[#allocation2 + $0x6d8] sm:$0xff]  ;;  %v2807_v32 = vpack.c.bf16 %v549_v26, %v541_v24  ;;  %v555_v34 = vld [vmem:[#allocation2 + $0x680] sm:$0xff] }
  0x69   : > { %2728 = vmatpush1.bf16.msra.mxu0 %v2727_v46  ;;  %v2745_v33 = vpack.c.bf16 %v564_v28, %v556_v27  ;;  %v563_v35 = vld [vmem:[#allocation2 + $0x6c0] sm:$0xff]  ;;  %v557_v36 = vld [vmem:[#allocation2 + $0x690] sm:$0xff]  ;;  %v2809_v37 = vpack.c.bf16 %v566_v30, %v558_v29  ;;  %v572_v39 = vld [vmem:[#allocation2 + $0x708] sm:$0xff] }
  0x6a   : > { %2792 = vmatpush1.bf16.msra.mxu1 %v2791_v47  ;;  %2730 = vmatprep.subr.bf16.mxu0 %v2729_v48  ;;  %v565_v38 = vld [vmem:[#allocation2 + $0x6d0] sm:$0xff]  ;;  %v580_v40 = vld [vmem:[#allocation2 + $0x748] sm:$0xff]  ;;  %v574_v41 = vld [vmem:[#allocation2 + $0x718] sm:$0xff]  ;;  %v2747_v43 = vpack.c.bf16 %v563_v35, %v555_v34 }
  0x6b   : > { %2794 = vmatprep.subr.bf16.mxu1 %v2793_v52  ;;  %v582_v42 = vld [vmem:[#allocation2 + $0x758] sm:$0xff]  ;;  %v2811_v44 = vpack.c.bf16 %v565_v38, %v557_v36  ;;  %v2749_v45 = vpack.c.bf16 %v580_v40, %v572_v39  ;;  %v571_v46 = vld [vmem:[#allocation2 + $0x700] sm:$0xff]  ;;  %v573_v48 = vld [vmem:[#allocation2 + $0x710] sm:$0xff] }
  0x6c   : > { %v579_v47 = vld [vmem:[#allocation2 + $0x740] sm:$0xff]  ;;  %v2813_v49 = vpack.c.bf16 %v582_v42, %v574_v41  ;;  %v581_v50 = vld [vmem:[#allocation2 + $0x750] sm:$0xff]  ;;  %v588_v51 = vld [vmem:[#allocation2 + $0x788] sm:$0xff] }
  0x6d   : > { %2732 = vmatpush1.bf16.msra.mxu0 %v2731_v58  ;;  %v596_v52 = vld [vmem:[#allocation2 + $0x7c8] sm:$0xff]  ;;  %v590_v53 = vld [vmem:[#allocation2 + $0x798] sm:$0xff]  ;;  %v2751_v55 = vpack.c.bf16 %v579_v47, %v571_v46  ;;  %v2815_v56 = vpack.c.bf16 %v581_v50, %v573_v48  ;;  %v587_v58 = vld [vmem:[#allocation2 + $0x780] sm:$0xff] }
  0x6e   : > { %2796 = vmatpush1.bf16.msra.mxu1 %v2795_v59  ;;  %2734 = vmatprep.subr.bf16.mxu0 %v2733_v60  ;;  %v598_v54 = vld [vmem:[#allocation2 + $0x7d8] sm:$0xff]  ;;  %v2753_v57 = vpack.c.bf16 %v596_v52, %v588_v51  ;;  %v595_v59 = vld [vmem:[#allocation2 + $0x7c0] sm:$0xff]  ;;  %v589_v60 = vld [vmem:[#allocation2 + $0x790] sm:$0xff] }
  0x6f   : > { %2798 = vmatprep.subr.bf16.mxu1 %v2797_v0  ;;  %v2817_v61 = vpack.c.bf16 %v598_v54, %v590_v53  ;;  %v597_v62 = vld [vmem:[#allocation2 + $0x7d0] sm:$0xff]  ;;  %v352_v63 = vld [vmem:[#allocation2 + $0x28] sm:$0xff]  ;;  %v354_v1 = vld [vmem:[#allocation2 + $0x38] sm:$0xff]  ;;  %v2755_v3 = vpack.c.bf16 %v595_v59, %v587_v58 }
  0x70   : > { %v360_v0 = vld [vmem:[#allocation2 + $0x68] sm:$0xff]  ;;  %v362_v2 = vld [vmem:[#allocation2 + $0x78] sm:$0xff]  ;;  %v2819_v4 = vpack.c.bf16 %v597_v62, %v589_v60  ;;  %v359_v7 = vld [vmem:[#allocation2 + $0x60] sm:$0xff] }
  0x71   : > { %2736 = vmatpush1.bf16.msra.mxu0 %v2735_v6  ;;  %v2821_v5 = vpack.c.bf16 %v360_v0, %v352_v63  ;;  %v351_v6 = vld [vmem:[#allocation2 + $0x20] sm:$0xff]  ;;  %v361_v10 = vld [vmem:[#allocation2 + $0x70] sm:$0xff]  ;;  %v368_v11 = vld [vmem:[#allocation2 + $0xa8] sm:$0xff] }
  0x72   : > { %2800 = vmatpush1.bf16.msra.mxu1 %v2799_v8  ;;  %2738 = vmatprep.subr.bf16.mxu0 %v2737_v9  ;;  %v2885_v8 = vpack.c.bf16 %v362_v2, %v354_v1  ;;  %v353_v9 = vld [vmem:[#allocation2 + $0x30] sm:$0xff]  ;;  %v376_v12 = vld [vmem:[#allocation2 + $0xe8] sm:$0xff]  ;;  %v2823_v14 = vpack.c.bf16 %v359_v7, %v351_v6  ;;  %v370_v15 = vld [vmem:[#allocation2 + $0xb8] sm:$0xff] }
  0x73   : > { %2802 = vmatprep.subr.bf16.mxu1 %v2801_v13  ;;  %v3378_v13 = vld [vmem:[%s3370_s9] sm:$0xff]  ;;  %v378_v17 = vld [vmem:[#allocation2 + $0xf8] sm:$0xff]  ;;  %v2887_v18 = vpack.c.bf16 %v361_v10, %v353_v9  ;;  %v2825_v22 = vpack.c.bf16 %v376_v12, %v368_v11  ;;  %v369_v23 = vld [vmem:[#allocation2 + $0xb0] sm:$0xff] }
  0x74   : > { %v377_v24 = vld [vmem:[#allocation2 + $0xf0] sm:$0xff]  ;;  %v384_v26 = vld [vmem:[#allocation2 + $0x128] sm:$0xff]  ;;  %v386_v30 = vld [vmem:[#allocation2 + $0x138] sm:$0xff] }
  0x75   : > { %2740 = vmatpush1.bf16.msra.mxu0 %v2739_v19  ;;  %v367_v19 = vld [vmem:[#allocation2 + $0xa0] sm:$0xff]  ;;  %v392_v27 = vld [vmem:[#allocation2 + $0x168] sm:$0xff]  ;;  %v3386_v28 = vld [vmem:[%s3370_s9 + $0x10] sm:$0xff] }
  0x76   : > { %2804 = vmatpush1.bf16.msra.mxu1 %v2803_v20  ;;  %2742 = vmatprep.subr.bf16.mxu0 %v2741_v21  ;;  %v375_v20 = vld [vmem:[#allocation2 + $0xe0] sm:$0xff]  ;;  %v3381_v21 = vld [vmem:[%s3370_s9 + $0x18] sm:$0xff]  ;;  %v3391_v35 = vld [vmem:[%s3370_s9 + $0x28] sm:$0xff]  ;;  %v2829_v36 = vpack.c.bf16 %v392_v27, %v384_v26 }
  0x77   : > { %2806 = vmatprep.subr.bf16.mxu1 %v2805_v25  ;;  %v2889_v25 = vpack.c.bf16 %v378_v17, %v370_v15  ;;  %v2827_v29 = vpack.c.bf16 %v375_v20, %v367_v19  ;;  %v391_v34 = vld [vmem:[#allocation2 + $0x160] sm:$0xff]  ;;  %v393_v38 = vld [vmem:[#allocation2 + $0x170] sm:$0xff]  ;;  %v400_v40 = vld [vmem:[#allocation2 + $0x1a8] sm:$0xff] }
  0x78   : > { %v408_v41 = vld [vmem:[#allocation2 + $0x1e8] sm:$0xff]  ;;  %v3396_v42 = vld [vmem:[%s3370_s9 + $0x20] sm:$0xff]  ;;  %v401_v51 = vld [vmem:[#allocation2 + $0x1b0] sm:$0xff] }
  0x79   : > { %2744 = vmatpush1.bf16.msra.mxu0 %v2743_v31  ;;  %v394_v31 = vld [vmem:[#allocation2 + $0x178] sm:$0xff]  ;;  %v399_v47 = vld [vmem:[#allocation2 + $0x1a0] sm:$0xff]  ;;  %v2833_v50 = vpack.c.bf16 %v408_v41, %v400_v40  ;;  %v409_v52 = vld [vmem:[#allocation2 + $0x1f0] sm:$0xff] }
  0x7a   : > { %2808 = vmatpush1.bf16.msra.mxu1 %v2807_v32  ;;  %2746 = vmatprep.subr.bf16.mxu0 %v2745_v33  ;;  %v2891_v32 = vpack.c.bf16 %v377_v24, %v369_v23  ;;  %v383_v33 = vld [vmem:[#allocation2 + $0x120] sm:$0xff]  ;;  %v2893_v39 = vpack.c.bf16 %v394_v31, %v386_v30  ;;  %v416_v54 = vld [vmem:[#allocation2 + $0x228] sm:$0xff]  ;;  %v418_v58 = vld [vmem:[#allocation2 + $0x238] sm:$0xff]  ;;  %v2899_v60 = vpack.c.bf16 %v409_v52, %v401_v51 }
  0x7b   : > { %2810 = vmatprep.subr.bf16.mxu1 %v2809_v37  ;;  %v385_v37 = vld [vmem:[#allocation2 + $0x130] sm:$0xff]  ;;  %v407_v48 = vld [vmem:[#allocation2 + $0x1e0] sm:$0xff]  ;;  %v426_v59 = vld [vmem:[#allocation2 + $0x278] sm:$0xff] }
  0x7c   : > { %v2895_v46 = vpack.c.bf16 %v393_v38, %v385_v37  ;;  %v423_v62 = vld [vmem:[#allocation2 + $0x260] sm:$0xff]  ;;  %v3411_v63 = vld [vmem:[%s3370_s9 + $0x48] sm:$0xff]  ;;  %v417_v1 = vld [vmem:[#allocation2 + $0x230] sm:$0xff] }
  0x7d   : > { %2748 = vmatpush1.bf16.msra.mxu0 %v2747_v43  ;;  %v2831_v43 = vpack.c.bf16 %v391_v34, %v383_v33  ;;  %v425_v2 = vld [vmem:[#allocation2 + $0x270] sm:$0xff]  ;;  %v3416_v6 = vld [vmem:[%s3370_s9 + $0x40] sm:$0xff]  ;;  %v442_v9 = vld [vmem:[#allocation2 + $0x2f8] sm:$0xff] }
  0x7e   : > { %2812 = vmatpush1.bf16.msra.mxu1 %v2811_v44  ;;  %2750 = vmatprep.subr.bf16.mxu0 %v2749_v45  ;;  %v402_v44 = vld [vmem:[#allocation2 + $0x1b8] sm:$0xff]  ;;  %v2903_v10 = vpack.c.bf16 %v425_v2, %v417_v1  ;;  %v431_v11 = vld [vmem:[#allocation2 + $0x2a0] sm:$0xff]  ;;  %v433_v17 = vld [vmem:[#allocation2 + $0x2b0] sm:$0xff] }
  0x7f   : > { %2814 = vmatprep.subr.bf16.mxu1 %v2813_v49  ;;  %v410_v45 = vld [vmem:[#allocation2 + $0x1f8] sm:$0xff]  ;;  %v439_v12 = vld [vmem:[#allocation2 + $0x2e0] sm:$0xff]  ;;  %v448_v20 = vld [vmem:[#allocation2 + $0x328] sm:$0xff] }
  0x80   : > { %v3401_v49 = vld [vmem:[%s3370_s9 + $0x38] sm:$0xff]  ;;  %v2897_v53 = vpack.c.bf16 %v410_v45, %v402_v44  ;;  %v3426_v23 = vld [vmem:[%s3370_s9 + $0x50] sm:$0xff]  ;;  %v2843_v24 = vpack.c.bf16 %v439_v12, %v431_v11  ;;  %v455_v30 = vld [vmem:[#allocation2 + $0x360] sm:$0xff] }
  0x81   : > { %2752 = vmatpush1.bf16.msra.mxu0 %v2751_v55  ;;  %v424_v55 = vld [vmem:[#allocation2 + $0x268] sm:$0xff]  ;;  %v458_v26 = vld [vmem:[#allocation2 + $0x378] sm:$0xff]  ;;  %v449_v33 = vld [vmem:[#allocation2 + $0x330] sm:$0xff] }
  0x82   : > { %2816 = vmatpush1.bf16.msra.mxu1 %v2815_v56  ;;  %2754 = vmatprep.subr.bf16.mxu0 %v2753_v57  ;;  %v3406_v56 = vld [vmem:[%s3370_s9 + $0x30] sm:$0xff]  ;;  %v2835_v57 = vpack.c.bf16 %v407_v48, %v399_v47  ;;  %v2837_v0 = vpack.c.bf16 %v424_v55, %v416_v54  ;;  %v3431_v31 = vld [vmem:[%s3370_s9 + $0x68] sm:$0xff]  ;;  %v466_v41 = vld [vmem:[#allocation2 + $0x3b8] sm:$0xff] }
  0x83   : > { %2818 = vmatprep.subr.bf16.mxu1 %v2817_v61  ;;  %v415_v61 = vld [vmem:[#allocation2 + $0x220] sm:$0xff]  ;;  %v457_v34 = vld [vmem:[#allocation2 + $0x370] sm:$0xff]  ;;  %v464_v37 = vld [vmem:[#allocation2 + $0x3a8] sm:$0xff] }
  0x84   : > { %v2839_v7 = vpack.c.bf16 %v423_v62, %v415_v61  ;;  %v472_v38 = vld [vmem:[#allocation2 + $0x3e8] sm:$0xff]  ;;  %v2911_v44 = vpack.c.bf16 %v457_v34, %v449_v33  ;;  %v463_v45 = vld [vmem:[#allocation2 + $0x3a0] sm:$0xff]  ;;  %v3441_v47 = vld [vmem:[%s3370_s9 + $0x78] sm:$0xff] }
  0x85   : > { %2756 = vmatpush1.bf16.msra.mxu0 %v2755_v3  ;;  %v2901_v3 = vpack.c.bf16 %v426_v59, %v418_v58  ;;  %v2849_v48 = vpack.c.bf16 %v472_v38, %v464_v37  ;;  %v473_v51 = vld [vmem:[#allocation2 + $0x3f0] sm:$0xff]  ;;  %v488_v54 = vld [vmem:[#allocation2 + $0x468] sm:$0xff]  ;;  %v482_v58 = vld [vmem:[#allocation2 + $0x438] sm:$0xff] }
  0x86   : > { %2820 = vmatpush1.bf16.msra.mxu1 %v2819_v4  ;;  %2822 = vmatprep.subr.bf16.mxu0 %v2821_v5  ;;  %v432_v4 = vld [vmem:[#allocation2 + $0x2a8] sm:$0xff]  ;;  %v3446_v55 = vld [vmem:[%s3370_s9 + $0x70] sm:$0xff]  ;;  %v490_v59 = vld [vmem:[#allocation2 + $0x478] sm:$0xff] }
  0x87   : > { %2886 = vmatprep.subr.bf16.mxu1 %v2885_v8  ;;  %v440_v5 = vld [vmem:[#allocation2 + $0x2e8] sm:$0xff]  ;;  %v434_v8 = vld [vmem:[#allocation2 + $0x2b8] sm:$0xff]  ;;  %v479_v61 = vld [vmem:[#allocation2 + $0x420] sm:$0xff] }
  0x88   : > { %710 = vmatmul.mubr.f32.vlgmr.msra.gmra.mrb[0].mxu0 %v3378_v13  ;;  %v2841_v15 = vpack.c.bf16 %v440_v5, %v432_v4  ;;  %v2905_v19 = vpack.c.bf16 %v442_v9, %v434_v8  ;;  %v487_v62 = vld [vmem:[#allocation2 + $0x460] sm:$0xff]  ;;  %v481_v2 = vld [vmem:[#allocation2 + $0x430] sm:$0xff]  ;;  %v2917_v4 = vpack.c.bf16 %v490_v59, %v482_v58  ;;  %v496_v5 = vld [vmem:[#allocation2 + $0x4a8] sm:$0xff] }
  0x89   : > { %871 = vmatmul.mubr.f32.vlgmr.msra.gmra.mrb[0].mxu1 %v3378_v13  ;;  %2824 = vmatpush1.bf16.msra.mxu0 %v2823_v14  ;;  %v3421_v14 = vld [vmem:[%s3370_s9 + $0x58] sm:$0xff]  ;;  %v3456_v8 = vld [vmem:[%s3370_s9 + $0x80] sm:$0xff]  ;;  %v2855_v9 = vpack.c.bf16 %v487_v62, %v479_v61  ;;  %v3471_v37 = vld [vmem:[%s3370_s9 + $0xa8] sm:$0xff] }
  0x8a   : > { %2888 = vmatpush1.bf16.msra.mxu1 %v2887_v18  ;;  %715 = vmatprep.mubr.f32.mxu0 %v3381_v21  ;;  %v441_v18 = vld [vmem:[#allocation2 + $0x2f0] sm:$0xff]  ;;  %v506_v11 = vld [vmem:[#allocation2 + $0x4f8] sm:$0xff]  ;;  %v511_v34 = vld [vmem:[#allocation2 + $0x520] sm:$0xff] }
  0x8b   : > { %876 = vmatprep.mubr.f32.mxu1 %v3381_v21  ;;  %2826 = vmatprep.subr.bf16.mxu0 %v2825_v22  ;;  %v456_v22 = vld [vmem:[#allocation2 + $0x368] sm:$0xff]  ;;  %v2907_v27 = vpack.c.bf16 %v441_v18, %v433_v17  ;;  %v503_v17 = vld [vmem:[#allocation2 + $0x4e0] sm:$0xff]  ;;  %v3461_v18 = vld [vmem:[%s3370_s9 + $0x98] sm:$0xff] }
  0x8c   : > { %716 = vmatmul.mubr.f32.gmra.mrb[2].mxu0 %v3386_v28  ;;  %2890 = vmatprep.subr.bf16.mxu1 %v2889_v25  ;;  %v450_v25 = vld [vmem:[#allocation2 + $0x338] sm:$0xff]  ;;  %v529_v59 = vld [vmem:[#allocation2 + $0x5b0] sm:$0xff]  ;;  %v544_v62 = vld [vmem:[#allocation2 + $0x628] sm:$0xff] }
  0x8d   : > { %877 = vmatmul.mubr.f32.gmra.mrb[2].mxu1 %v3386_v28  ;;  %2828 = vmatpush1.bf16.msra.mxu0 %v2827_v29  ;;  %v447_v29 = vld [vmem:[#allocation2 + $0x320] sm:$0xff] }
  0x8e   : > { %2892 = vmatpush1.bf16.msra.mxu1 %v2891_v32  ;;  %721 = vmatprep.mubr.f32.mxu0 %v3391_v35  ;;  %v2845_v32 = vpack.c.bf16 %v456_v22, %v448_v20  ;;  %v2847_v40 = vpack.c.bf16 %v455_v30, %v447_v29  ;;  %v497_v20 = vld [vmem:[#allocation2 + $0x4b0] sm:$0xff]  ;;  %v514_v30 = vld [vmem:[#allocation2 + $0x538] sm:$0xff] }
  0x8f   : > { %882 = vmatprep.mubr.f32.mxu1 %v3391_v35  ;;  %2830 = vmatprep.subr.bf16.mxu0 %v2829_v36  ;;  %v2909_v36 = vpack.c.bf16 %v458_v26, %v450_v25  ;;  %v505_v22 = vld [vmem:[#allocation2 + $0x4f0] sm:$0xff]  ;;  %v512_v25 = vld [vmem:[#allocation2 + $0x528] sm:$0xff] }
  0x90   : > { %722 = vmatmul.mubr.f32.gmra.mrb[4].mxu0 %v3396_v42  ;;  %2894 = vmatprep.subr.bf16.mxu1 %v2893_v39  ;;  %v3436_v39 = vld [vmem:[%s3370_s9 + $0x60] sm:$0xff]  ;;  %v520_v26 = vld [vmem:[#allocation2 + $0x568] sm:$0xff]  ;;  %v2923_v33 = vpack.c.bf16 %v505_v22, %v497_v20 }
  0x91   : > { %883 = vmatmul.mubr.f32.gmra.mrb[4].mxu1 %v3396_v42  ;;  %2832 = vmatpush1.bf16.msra.mxu0 %v2831_v43  ;;  %v474_v43 = vld [vmem:[#allocation2 + $0x3f8] sm:$0xff]  ;;  %v2861_v38 = vpack.c.bf16 %v520_v26, %v512_v25  ;;  %v560_v20 = vld [vmem:[#allocation2 + $0x6a8] sm:$0xff] }
  0x92   : > { %2896 = vmatpush1.bf16.msra.mxu1 %v2895_v46  ;;  %727 = vmatprep.mubr.f32.mxu0 %v3401_v49  ;;  %v471_v46 = vld [vmem:[#allocation2 + $0x3e0] sm:$0xff]  ;;  %v2913_v52 = vpack.c.bf16 %v474_v43, %v466_v41  ;;  %v521_v41 = vld [vmem:[#allocation2 + $0x570] sm:$0xff]  ;;  %v568_v22 = vld [vmem:[#allocation2 + $0x6e8] sm:$0xff] }
  0x93   : > { %888 = vmatprep.mubr.f32.mxu1 %v3401_v49  ;;  %2834 = vmatprep.subr.bf16.mxu0 %v2833_v50  ;;  %v465_v50 = vld [vmem:[#allocation2 + $0x3b0] sm:$0xff]  ;;  %v562_v26 = vld [vmem:[#allocation2 + $0x6b8] sm:$0xff] }
  0x94   : > { %728 = vmatmul.mubr.f32.gmra.mrb[6].mxu0 %v3406_v56  ;;  %2898 = vmatprep.subr.bf16.mxu1 %v2897_v53  ;;  %v480_v53 = vld [vmem:[#allocation2 + $0x428] sm:$0xff] }
  0x95   : > { %889 = vmatmul.mubr.f32.gmra.mrb[6].mxu1 %v3406_v56  ;;  %2836 = vmatpush1.bf16.msra.mxu0 %v2835_v57  ;;  %v2851_v57 = vpack.c.bf16 %v471_v46, %v463_v45  ;;  %v2853_v1 = vpack.c.bf16 %v488_v54, %v480_v53  ;;  %v536_v45 = vld [vmem:[#allocation2 + $0x5e8] sm:$0xff]  ;;  %v3476_v46 = vld [vmem:[%s3370_s9 + $0xa0] sm:$0xff] }
  0x96   : > { %2900 = vmatpush1.bf16.msra.mxu1 %v2899_v60  ;;  %733 = vmatprep.mubr.f32.mxu0 %v3411_v63  ;;  %v2915_v60 = vpack.c.bf16 %v473_v51, %v465_v50  ;;  %v530_v50 = vld [vmem:[#allocation2 + $0x5b8] sm:$0xff]  ;;  %v527_v53 = vld [vmem:[#allocation2 + $0x5a0] sm:$0xff] }
  0x97   : > { %894 = vmatprep.mubr.f32.mxu1 %v3411_v63  ;;  %2838 = vmatprep.subr.bf16.mxu0 %v2837_v0  ;;  %v3451_v0 = vld [vmem:[%s3370_s9 + $0x88] sm:$0xff]  ;;  %v538_v51 = vld [vmem:[#allocation2 + $0x5f8] sm:$0xff]  ;;  %v535_v54 = vld [vmem:[#allocation2 + $0x5e0] sm:$0xff] }
  0x98   : > { %734 = vmatmul.mubr.f32.gmra.mrb[8].mxu0 %v3416_v6  ;;  %2902 = vmatprep.subr.bf16.mxu1 %v2901_v3  ;;  %v489_v3 = vld [vmem:[#allocation2 + $0x470] sm:$0xff]  ;;  %v2929_v61 = vpack.c.bf16 %v538_v51, %v530_v50  ;;  %v578_v50 = vld [vmem:[#allocation2 + $0x738] sm:$0xff] }
  0x99   : > { %895 = vmatmul.mubr.f32.gmra.mrb[8].mxu1 %v3416_v6  ;;  %2840 = vmatpush1.bf16.msra.mxu0 %v2839_v7  ;;  %v504_v7 = vld [vmem:[#allocation2 + $0x4e8] sm:$0xff]  ;;  %v2919_v12 = vpack.c.bf16 %v489_v3, %v481_v2  ;;  %v3486_v2 = vld [vmem:[%s3370_s9 + $0xb0] sm:$0xff]  ;;  %v2867_v3 = vpack.c.bf16 %v535_v54, %v527_v53  ;;  %v586_v51 = vld [vmem:[#allocation2 + $0x778] sm:$0xff] }
  0x9a   : > { %2904 = vmatpush1.bf16.msra.mxu1 %v2903_v10  ;;  %739 = vmatprep.mubr.f32.mxu0 %v3421_v14  ;;  %v498_v10 = vld [vmem:[#allocation2 + $0x4b8] sm:$0xff]  ;;  %v575_v53 = vld [vmem:[#allocation2 + $0x720] sm:$0xff] }
  0x9b   : > { %900 = vmatprep.mubr.f32.mxu1 %v3421_v14  ;;  %2842 = vmatprep.subr.bf16.mxu0 %v2841_v15  ;;  %v495_v15 = vld [vmem:[#allocation2 + $0x4a0] sm:$0xff] }
  0x9c   : > { %740 = vmatmul.mubr.f32.gmra.mrb[10].mxu0 %v3426_v23  ;;  %2906 = vmatprep.subr.bf16.mxu1 %v2905_v19  ;;  %v2857_v19 = vpack.c.bf16 %v504_v7, %v496_v5  ;;  %v2859_v29 = vpack.c.bf16 %v503_v17, %v495_v15  ;;  %v554_v5 = vld [vmem:[#allocation2 + $0x678] sm:$0xff]  ;;  %v545_v15 = vld [vmem:[#allocation2 + $0x630] sm:$0xff]  ;;  %v583_v54 = vld [vmem:[#allocation2 + $0x760] sm:$0xff] }
  0x9d   : > { %901 = vmatmul.mubr.f32.gmra.mrb[10].mxu1 %v3426_v23  ;;  %2844 = vmatpush1.bf16.msra.mxu0 %v2843_v24  ;;  %v2921_v24 = vpack.c.bf16 %v506_v11, %v498_v10  ;;  %v551_v10 = vld [vmem:[#allocation2 + $0x660] sm:$0xff]  ;;  %v3491_v11 = vld [vmem:[%s3370_s9 + $0xc8] sm:$0xff]  ;;  %v553_v17 = vld [vmem:[#allocation2 + $0x670] sm:$0xff] }
  0x9e   : > { %2908 = vmatpush1.bf16.msra.mxu1 %v2907_v27  ;;  %745 = vmatprep.mubr.f32.mxu0 %v3431_v31  ;;  %v3466_v27 = vld [vmem:[%s3370_s9 + $0x90] sm:$0xff] }
  0x9f   : > { %906 = vmatprep.mubr.f32.mxu1 %v3431_v31  ;;  %2846 = vmatprep.subr.bf16.mxu0 %v2845_v32  ;;  %v522_v32 = vld [vmem:[#allocation2 + $0x578] sm:$0xff] }
  0xa0   : > { %746 = vmatmul.mubr.f32.gmra.mrb[12].mxu0 %v3436_v39  ;;  %2910 = vmatprep.subr.bf16.mxu1 %v2909_v36  ;;  %v519_v36 = vld [vmem:[#allocation2 + $0x560] sm:$0xff]  ;;  %v2925_v43 = vpack.c.bf16 %v522_v32, %v514_v30  ;;  %v2935_v30 = vpack.c.bf16 %v553_v17, %v545_v15  ;;  %v3521_v17 = vld [vmem:[%s3370_s9 + $0xf8] sm:$0xff] }
  0xa1   : > { %907 = vmatmul.mubr.f32.gmra.mrb[12].mxu1 %v3436_v39  ;;  %2848 = vmatpush1.bf16.msra.mxu0 %v2847_v40  ;;  %v513_v40 = vld [vmem:[#allocation2 + $0x530] sm:$0xff]  ;;  %v559_v32 = vld [vmem:[#allocation2 + $0x6a0] sm:$0xff] }
  0xa2   : > { %2912 = vmatpush1.bf16.msra.mxu1 %v2911_v44  ;;  %751 = vmatprep.mubr.f32.mxu0 %v3441_v47  ;;  %v528_v44 = vld [vmem:[#allocation2 + $0x5a8] sm:$0xff]  ;;  %v599_v15 = vld [vmem:[#allocation2 + $0x7e0] sm:$0xff] }
  0xa3   : > { %912 = vmatprep.mubr.f32.mxu1 %v3441_v47  ;;  %2850 = vmatprep.subr.bf16.mxu0 %v2849_v48  ;;  %v2863_v48 = vpack.c.bf16 %v519_v36, %v511_v34  ;;  %v2865_v58 = vpack.c.bf16 %v536_v45, %v528_v44  ;;  %v3501_v34 = vld [vmem:[%s3370_s9 + $0xd8] sm:$0xff]  ;;  %v2873_v36 = vpack.c.bf16 %v568_v22, %v560_v20  ;;  %v584_v44 = vld [vmem:[#allocation2 + $0x768] sm:$0xff]  ;;  %v3506_v45 = vld [vmem:[%s3370_s9 + $0xd0] sm:$0xff] }
  0xa4   : > { %752 = vmatmul.mubr.f32.gmra.mrb[14].mxu0 %v3446_v55  ;;  %2914 = vmatprep.subr.bf16.mxu1 %v2913_v52  ;;  %v2927_v52 = vpack.c.bf16 %v521_v41, %v513_v40  ;;  %v569_v40 = vld [vmem:[#allocation2 + $0x6f0] sm:$0xff] }
  0xa5   : > { %913 = vmatmul.mubr.f32.gmra.mrb[14].mxu1 %v3446_v55  ;;  %2852 = vmatpush1.bf16.msra.mxu0 %v2851_v57  ;;  %v3481_v57 = vld [vmem:[%s3370_s9 + $0xb8] sm:$0xff]  ;;  %v593_v20 = vld [vmem:[#allocation2 + $0x7b0] sm:$0xff] }
  0xa6   : > { %2916 = vmatpush1.bf16.msra.mxu1 %v2915_v60  ;;  %757 = vmatprep.mubr.f32.mxu0 %v3451_v0  ;;  %v537_v60 = vld [vmem:[#allocation2 + $0x5f0] sm:$0xff] }
  0xa7   : > { %918 = vmatprep.mubr.f32.mxu1 %v3451_v0  ;;  %2854 = vmatprep.subr.bf16.mxu0 %v2853_v1  ;;  %v552_v1 = vld [vmem:[#allocation2 + $0x668] sm:$0xff]  ;;  %v2931_v7 = vpack.c.bf16 %v537_v60, %v529_v59  ;;  %v577_v60 = vld [vmem:[#allocation2 + $0x730] sm:$0xff] }
  0xa8   : > { %758 = vmatmul.mubr.f32.gmra.mrb[16].mxu0 %v3456_v8  ;;  %2918 = vmatprep.subr.bf16.mxu1 %v2917_v4  ;;  %v546_v4 = vld [vmem:[#allocation2 + $0x638] sm:$0xff]  ;;  %v601_v22 = vld [vmem:[#allocation2 + $0x7f0] sm:$0xff] }
  0xa9   : > { %919 = vmatmul.mubr.f32.gmra.mrb[16].mxu1 %v3456_v8  ;;  %2856 = vmatpush1.bf16.msra.mxu0 %v2855_v9  ;;  %v543_v9 = vld [vmem:[#allocation2 + $0x620] sm:$0xff] }
  0xaa   : > { %2920 = vmatpush1.bf16.msra.mxu1 %v2919_v12  ;;  %763 = vmatprep.mubr.f32.mxu0 %v3461_v18  ;;  %v2869_v12 = vpack.c.bf16 %v552_v1, %v544_v62  ;;  %v2871_v25 = vpack.c.bf16 %v551_v10, %v543_v9  ;;  %v2941_v62 = vpack.c.bf16 %v586_v51, %v578_v50  ;;  %v592_v1 = vld [vmem:[#allocation2 + $0x7a8] sm:$0xff]  ;;  %v602_v9 = vld [vmem:[#allocation2 + $0x7f8] sm:$0xff]  ;;  %v1307_v51 = vld [vmem:[#allocation4 + $0x90] sm:$0xff] }
  0xab   : > { %924 = vmatprep.mubr.f32.mxu1 %v3461_v18  ;;  %2858 = vmatprep.subr.bf16.mxu0 %v2857_v19  ;;  %v2933_v19 = vpack.c.bf16 %v554_v5, %v546_v4  ;;  %v3516_v4 = vld [vmem:[%s3370_s9 + $0xe0] sm:$0xff]  ;;  %v2879_v5 = vpack.c.bf16 %v583_v54, %v575_v53  ;;  %v1322_v50 = vld [vmem:[#allocation4 + $0x108] sm:$0xff]  ;;  %v1339_v53 = vld [vmem:[#allocation4 + $0x190] sm:$0xff] }
  0xac   : > { %764 = vmatmul.mubr.f32.gmra.mrb[18].mxu0 %v3466_v27  ;;  %2922 = vmatprep.subr.bf16.mxu1 %v2921_v24  ;;  %v3496_v24 = vld [vmem:[%s3370_s9 + $0xc0] sm:$0xff]  ;;  %v1340_v54 = vld [vmem:[#allocation4 + $0x198] sm:$0xff] }
  0xad   : > { %925 = vmatmul.mubr.f32.gmra.mrb[18].mxu1 %v3466_v27  ;;  %2860 = vmatpush1.bf16.msra.mxu0 %v2859_v29  ;;  %v570_v29 = vld [vmem:[#allocation2 + $0x6f8] sm:$0xff] }
  0xae   : > { %2924 = vmatpush1.bf16.msra.mxu1 %v2923_v33  ;;  %769 = vmatprep.mubr.f32.mxu0 %v3471_v37  ;;  %v567_v33 = vld [vmem:[#allocation2 + $0x6e0] sm:$0xff]  ;;  %v2937_v41 = vpack.c.bf16 %v570_v29, %v562_v26  ;;  %v1306_v29 = vld [vmem:[#allocation4 + $0x88] sm:$0xff] }
  0xaf   : > { %930 = vmatprep.mubr.f32.mxu1 %v3471_v37  ;;  %2862 = vmatprep.subr.bf16.mxu0 %v2861_v38  ;;  %v561_v38 = vld [vmem:[#allocation2 + $0x6b0] sm:$0xff]  ;;  %v1305_v26 = vld [vmem:[#allocation4 + $0x80] sm:$0xff] }
  0xb0   : > { %770 = vmatmul.mubr.f32.gmra.mrb[20].mxu0 %v3476_v46  ;;  %2926 = vmatprep.subr.bf16.mxu1 %v2925_v43  ;;  %v576_v43 = vld [vmem:[#allocation2 + $0x728] sm:$0xff] }
  0xb1   : > { %931 = vmatmul.mubr.f32.gmra.mrb[20].mxu1 %v3476_v46  ;;  %2864 = vmatpush1.bf16.msra.mxu0 %v2863_v48  ;;  %v2875_v48 = vpack.c.bf16 %v567_v33, %v559_v32  ;;  %v2877_v59 = vpack.c.bf16 %v584_v44, %v576_v43  ;;  %v1337_v33 = vld [vmem:[#allocation4 + $0x180] sm:$0xff]  ;;  %v1290_v43 = vld [vmem:[#allocation4 + $0x8] sm:$0xff] }
  0xb2   : > { %2928 = vmatpush1.bf16.msra.mxu1 %v2927_v52  ;;  %775 = vmatprep.mubr.f32.mxu0 %v3481_v57  ;;  %v2939_v52 = vpack.c.bf16 %v569_v40, %v561_v38  ;;  %v2947_v38 = vpack.c.bf16 %v601_v22, %v593_v20  ;;  %v2949_v40 = vpack.c.bf16 %v1306_v29, %v1305_v26  ;;  %v1321_v44 = vld [vmem:[#allocation4 + $0x100] sm:$0xff] }
  0xb3   : > { %936 = vmatprep.mubr.f32.mxu1 %v3481_v57  ;;  %2866 = vmatprep.subr.bf16.mxu0 %v2865_v58  ;;  %v3511_v58 = vld [vmem:[%s3370_s9 + $0xe8] sm:$0xff]  ;;  %v1293_v22 = vld [vmem:[#allocation4 + $0x20] sm:$0xff] }
  0xb4   : > { %776 = vmatmul.mubr.f32.gmra.mrb[22].mxu0 %v3486_v2  ;;  %2930 = vmatprep.subr.bf16.mxu1 %v2929_v61  ;;  %v585_v61 = vld [vmem:[#allocation2 + $0x770] sm:$0xff]  ;;  %v1325_v26 = vld [vmem:[#allocation4 + $0x120] sm:$0xff] }
  0xb5   : > { %937 = vmatmul.mubr.f32.gmra.mrb[22].mxu1 %v3486_v2  ;;  %2868 = vmatpush1.bf16.msra.mxu0 %v2867_v3  ;;  %v600_v3 = vld [vmem:[#allocation2 + $0x7e8] sm:$0xff]  ;;  %v2943_v10 = vpack.c.bf16 %v585_v61, %v577_v60  ;;  %v2983_v60 = vpack.c.bf16 %v1322_v50, %v1321_v44  ;;  %v1296_v44 = vld [vmem:[#allocation4 + $0x38] sm:$0xff] }
  0xb6   : > { %2932 = vmatpush1.bf16.msra.mxu1 %v2931_v7  ;;  %781 = vmatprep.mubr.f32.mxu0 %v3491_v11  ;;  %v594_v7 = vld [vmem:[#allocation2 + $0x7b8] sm:$0xff] }
  0xb7   : > { %942 = vmatprep.mubr.f32.mxu1 %v3491_v11  ;;  %2870 = vmatprep.subr.bf16.mxu0 %v2869_v12  ;;  %v591_v12 = vld [vmem:[#allocation2 + $0x7a0] sm:$0xff] }
  0xb8   : > { %782 = vmatmul.mubr.f32.gmra.mrb[24].mxu0 %v3496_v24  ;;  %2934 = vmatprep.subr.bf16.mxu1 %v2933_v19  ;;  %v2881_v19 = vpack.c.bf16 %v600_v3, %v592_v1  ;;  %v2883_v32 = vpack.c.bf16 %v599_v15, %v591_v12  ;;  %v1292_v1 = vld [vmem:[#allocation4 + $0x18] sm:$0xff]  ;;  %v1323_v3 = vld [vmem:[#allocation4 + $0x110] sm:$0xff]  ;;  %v1341_v12 = vld [vmem:[#allocation4 + $0x1a0] sm:$0xff] }
  0xb9   : > { %943 = vmatmul.mubr.f32.gmra.mrb[24].mxu1 %v3496_v24  ;;  %2872 = vmatpush1.bf16.msra.mxu0 %v2871_v25  ;;  %v2945_v25 = vpack.c.bf16 %v602_v9, %v594_v7  ;;  %v1324_v7 = vld [vmem:[#allocation4 + $0x118] sm:$0xff]  ;;  %v1309_v9 = vld [vmem:[#allocation4 + $0xa0] sm:$0xff]  ;;  %v1342_v15 = vld [vmem:[#allocation4 + $0x1a8] sm:$0xff] }
  0xba   : > { %2936 = vmatpush1.bf16.msra.mxu1 %v2935_v30  ;;  %787 = vmatprep.mubr.f32.mxu0 %v3501_v34  ;;  %v3526_v30 = vld [vmem:[%s3370_s9 + $0xf0] sm:$0xff]  ;;  %v2989_v29 = vpack.c.bf16 %v1342_v15, %v1341_v12  ;;  %s3887_s9 = scalar_lea.vmem %s3915_s7, %s2279_s15 }
  0xbb   : > { %948 = vmatprep.mubr.f32.mxu1 %v3501_v34  ;;  %2874 = vmatprep.subr.bf16.mxu0 %v2873_v36  ;;  %v1338_v36 = vld [vmem:[#allocation4 + $0x188] sm:$0xff] }
  0xbc   : > { %788 = vmatmul.mubr.f32.gmra.mrb[26].mxu0 %v3506_v45  ;;  %2938 = vmatprep.subr.bf16.mxu1 %v2937_v41  ;;  %v1289_v41 = vld [vmem:[#allocation4] sm:$0xff] }
  0xbd   : > { %949 = vmatmul.mubr.f32.gmra.mrb[26].mxu1 %v3506_v45  ;;  %2876 = vmatpush1.bf16.msra.mxu0 %v2875_v48  ;;  %v2981_v48 = vpack.c.bf16 %v1338_v36, %v1337_v33  ;;  %v1312_v33 = vld [vmem:[#allocation4 + $0xb8] sm:$0xff] }
  0xbe   : > { %2940 = vmatpush1.bf16.msra.mxu1 %v2939_v52  ;;  %793 = vmatprep.mubr.f32.mxu0 %v3511_v58  ;;  %v1308_v52 = vld [vmem:[#allocation4 + $0x98] sm:$0xff] }
  0xbf   : > { %954 = vmatprep.mubr.f32.mxu1 %v3511_v58  ;;  %2878 = vmatprep.subr.bf16.mxu0 %v2877_v59  ;;  %v2951_v59 = vpack.c.bf16 %v1290_v43, %v1289_v41  ;;  %v2953_v61 = vpack.c.bf16 %v1308_v52, %v1307_v51  ;;  %v1344_v36 = vld [vmem:[#allocation4 + $0x1b8] sm:$0xff]  ;;  %v1295_v43 = vld [vmem:[#allocation4 + $0x30] sm:$0xff]  ;;  %v1313_v51 = vld [vmem:[#allocation4 + $0xc0] sm:$0xff] }
  0xc0   : > { %794 = vmatmul.mubr.f32.gmra.mrb[28].mxu0 %v3516_v4  ;;  %2942 = vmatprep.subr.bf16.mxu1 %v2941_v62  ;;  %v1291_v62 = vld [vmem:[#allocation4 + $0x10] sm:$0xff]  ;;  %v1314_v52 = vld [vmem:[#allocation4 + $0xc8] sm:$0xff] }
  0xc1   : > { %955 = vmatmul.mubr.f32.gmra.mrb[28].mxu1 %v3516_v4  ;;  %2880 = vmatpush1.bf16.msra.mxu0 %v2879_v5  ;;  %v2985_v5 = vpack.c.bf16 %v1340_v54, %v1339_v53  ;;  %v1346_v53 = vld [vmem:[#allocation4 + $0x1c8] sm:$0xff]  ;;  %v2963_v54 = vpack.c.bf16 %v1296_v44, %v1295_v43  ;;  %v1320_v43 = vld [vmem:[#allocation4 + $0xf8] sm:$0xff] }
  0xc2   : > { %2944 = vmatpush1.bf16.msra.mxu1 %v2943_v10  ;;  %799 = vmatprep.mubr.f32.mxu0 %v3521_v17  ;;  %v1310_v10 = vld [vmem:[#allocation4 + $0xa8] sm:$0xff]  ;;  %v1352_v44 = vld [vmem:[#allocation4 + $0x1f8] sm:$0xff] }
  0xc3   : > { %960 = vmatprep.mubr.f32.mxu1 %v3521_v17  ;;  %2882 = vmatprep.subr.bf16.mxu0 %v2881_v19  ;;  %v2987_v19 = vpack.c.bf16 %v1324_v7, %v1323_v3  ;;  %v2957_v20 = vpack.c.bf16 %v1310_v10, %v1309_v9  ;;  %v1316_v7 = vld [vmem:[#allocation4 + $0xd8] sm:$0xff] }
  0xc4   : > { %800 = vmatmul.mubr.f32.gmra.mrb[30].mxu0 %v3526_v30  ;;  %2946 = vmatprep.subr.bf16.mxu1 %v2945_v25  ;;  %v1294_v25 = vld [vmem:[#allocation4 + $0x28] sm:$0xff]  ;;  %v1348_v9 = vld [vmem:[#allocation4 + $0x1d8] sm:$0xff] }
  0xc5   : > { %961 = vmatmul.mubr.f32.gmra.mrb[30].mxu1 %v3526_v30  ;;  %2884 = vmatpush1.bf16.msra.mxu0 %v2883_v32  ;;  %v1311_v32 = vld [vmem:[#allocation4 + $0xb0] sm:$0xff] }
  0xc6   : > { %2948 = vmatpush1.bf16.msra.mxu1 %v2947_v38  ;;  %1031 = vmatprep.mubr.f32.mxu0 %v3373_v16  ;;  %v2959_v38 = vpack.c.bf16 %v1294_v25, %v1293_v22  ;;  %v2961_v41 = vpack.c.bf16 %v1312_v33, %v1311_v32  ;;  %v1317_v25 = vld [vmem:[#allocation4 + $0xe0] sm:$0xff] }
  0xc7   : > { %1192 = vmatprep.mubr.f32.mxu1 %v3373_v16  ;;  %2950 = vmatprep.subr.bf16.mxu0 %v2949_v40  ;;  %v2955_v16 = vpack.c.bf16 %v1292_v1, %v1291_v62  ;;  %v1298_v62 = vld [vmem:[#allocation4 + $0x48] sm:$0xff]  ;;  %v1329_v1 = vld [vmem:[#allocation4 + $0x140] sm:$0xff] }
  0xc8   : > { %1032 = vmatmul.mubr.f32.vlgmr.msra.gmra.mrb[32].mxu0 %v3378_v13  ;;  %2982 = vmatprep.subr.bf16.mxu1 %v2981_v48  ;;  %v1327_v48 = vld [vmem:[#allocation4 + $0x130] sm:$0xff] }
  0xc9   : > { %1193 = vmatmul.mubr.f32.vlgmr.msra.gmra.mrb[32].mxu1 %v3378_v13  ;;  %1037 = vmatprep.mubr.f32.mxu0 %v3381_v21  ;;  %v1326_v13 = vld [vmem:[#allocation4 + $0x128] sm:$0xff] }
  0xca   : > { %1198 = vmatprep.mubr.f32.mxu1 %v3381_v21  ;;  %2952 = vmatpush3.bf16.msra.mxu0 %v2951_v59  ;;  %v1343_v21 = vld [vmem:[#allocation4 + $0x1b0] sm:$0xff]  ;;  %v2991_v40 = vpack.c.bf16 %v1326_v13, %v1325_v26  ;;  %v1318_v26 = vld [vmem:[#allocation4 + $0xe8] sm:$0xff] }
  0xcb   : > { %2984 = vmatpush3.bf16.msra.mxu1 %v2983_v60  ;;  %2954 = vmatprep.subr.bf16.mxu0 %v2953_v61  ;;  %v2993_v50 = vpack.c.bf16 %v1344_v36, %v1343_v21  ;;  %v2965_v60 = vpack.c.bf16 %v1314_v52, %v1313_v51  ;;  %v1297_v61 = vld [vmem:[#allocation4 + $0x40] sm:$0xff]  ;;  %v2973_v33 = vpack.c.bf16 %v1318_v26, %v1317_v25  ;;  %v1302_v36 = vld [vmem:[#allocation4 + $0x68] sm:$0xff]  ;;  %v1303_v51 = vld [vmem:[#allocation4 + $0x70] sm:$0xff] }
  0xcc   : > { %1038 = vmatmul.mubr.f32.gmra.mrb[34].mxu0 %v3386_v28  ;;  %2986 = vmatprep.subr.bf16.mxu1 %v2985_v5  ;;  %v1315_v5 = vld [vmem:[#allocation4 + $0xd0] sm:$0xff]  ;;  %v2967_v10 = vpack.c.bf16 %v1298_v62, %v1297_v61  ;;  %v1301_v21 = vld [vmem:[#allocation4 + $0x60] sm:$0xff]  ;;  %v1304_v52 = vld [vmem:[#allocation4 + $0x78] sm:$0xff] }
  0xcd   : > { %1199 = vmatmul.mubr.f32.gmra.mrb[34].mxu1 %v3386_v28  ;;  %1043 = vmatprep.mubr.f32.mxu0 %v3391_v35  ;;  %v1328_v28 = vld [vmem:[#allocation4 + $0x138] sm:$0xff]  ;;  %v2969_v15 = vpack.c.bf16 %v1316_v7, %v1315_v5  ;;  %v1401_v62 = vld [vmem:[#allocation4 + $0x380] sm:$0xff]  ;;  %v1403_v5 = vld [vmem:[#allocation4 + $0x390] sm:$0xff] }
  0xce   : > { %1204 = vmatprep.mubr.f32.mxu1 %v3391_v35  ;;  %2956 = vmatpush3.bf16.msra.mxu0 %v2955_v16  ;;  %v1345_v35 = vld [vmem:[#allocation4 + $0x1c0] sm:$0xff]  ;;  %v2995_v59 = vpack.c.bf16 %v1328_v28, %v1327_v48  ;;  %v1299_v16 = vld [vmem:[#allocation4 + $0x50] sm:$0xff]  ;;  %v2975_v48 = vpack.c.bf16 %v1302_v36, %v1301_v21  ;;  %v1404_v7 = vld [vmem:[#allocation4 + $0x398] sm:$0xff] }
  0xcf   : > { %2988 = vmatpush3.bf16.msra.mxu1 %v2987_v19  ;;  %2958 = vmatprep.subr.bf16.mxu0 %v2957_v20  ;;  %v2997_v3 = vpack.c.bf16 %v1346_v53, %v1345_v35  ;;  %v1300_v19 = vld [vmem:[#allocation4 + $0x58] sm:$0xff]  ;;  %v1331_v20 = vld [vmem:[#allocation4 + $0x150] sm:$0xff] }
  0xd0   : > { %1044 = vmatmul.mubr.f32.gmra.mrb[36].mxu0 %v3396_v42  ;;  %2990 = vmatprep.subr.bf16.mxu1 %v2989_v29  ;;  %v1350_v29 = vld [vmem:[#allocation4 + $0x1e8] sm:$0xff]  ;;  %v2971_v13 = vpack.c.bf16 %v1300_v19, %v1299_v16  ;;  %v1335_v53 = vld [vmem:[#allocation4 + $0x170] sm:$0xff]  ;;  %v1356_v16 = vld [vmem:[#allocation4 + $0x218] sm:$0xff] }
  0xd1   : > { %1205 = vmatmul.mubr.f32.gmra.mrb[36].mxu1 %v3396_v42  ;;  %1049 = vmatprep.mubr.f32.mxu0 %v3401_v49  ;;  %v1330_v42 = vld [vmem:[#allocation4 + $0x148] sm:$0xff]  ;;  %v1387_v25 = vld [vmem:[#allocation4 + $0x310] sm:$0xff]  ;;  %v1388_v26 = vld [vmem:[#allocation4 + $0x318] sm:$0xff] }
  0xd2   : > { %1210 = vmatprep.mubr.f32.mxu1 %v3401_v49  ;;  %2960 = vmatpush3.bf16.msra.mxu0 %v2959_v38  ;;  %v1347_v49 = vld [vmem:[#allocation4 + $0x1d0] sm:$0xff]  ;;  %v2999_v12 = vpack.c.bf16 %v1330_v42, %v1329_v1  ;;  %v1333_v38 = vld [vmem:[#allocation4 + $0x160] sm:$0xff]  ;;  %v1402_v1 = vld [vmem:[#allocation4 + $0x388] sm:$0xff] }
  0xd3   : > { %2992 = vmatpush3.bf16.msra.mxu1 %v2991_v40  ;;  %2962 = vmatprep.subr.bf16.mxu0 %v2961_v41  ;;  %v3001_v22 = vpack.c.bf16 %v1348_v9, %v1347_v49  ;;  %v1319_v41 = vld [vmem:[#allocation4 + $0xf0] sm:$0xff] }
  0xd4   : > { %1050 = vmatmul.mubr.f32.gmra.mrb[38].mxu0 %v3406_v56  ;;  %2994 = vmatprep.subr.bf16.mxu1 %v2993_v50  ;;  %v2977_v28 = vpack.c.bf16 %v1320_v43, %v1319_v41 }
  0xd5   : > { %1211 = vmatmul.mubr.f32.gmra.mrb[38].mxu1 %v3406_v56  ;;  %1055 = vmatprep.mubr.f32.mxu0 %v3411_v63  ;;  %v1332_v56 = vld [vmem:[#allocation4 + $0x158] sm:$0xff] }
  0xd6   : > { %1216 = vmatprep.mubr.f32.mxu1 %v3411_v63  ;;  %2964 = vmatpush3.bf16.msra.mxu0 %v2963_v54  ;;  %v1349_v63 = vld [vmem:[#allocation4 + $0x1e0] sm:$0xff]  ;;  %v3003_v32 = vpack.c.bf16 %v1332_v56, %v1331_v20 }
  0xd7   : > { %2996 = vmatpush3.bf16.msra.mxu1 %v2995_v59  ;;  %2966 = vmatprep.subr.bf16.mxu0 %v2965_v60  ;;  %v3005_v40 = vpack.c.bf16 %v1350_v29, %v1349_v63  ;;  %v1369_v54 = vld [vmem:[#allocation4 + $0x280] sm:$0xff]  ;;  %v1370_v59 = vld [vmem:[#allocation4 + $0x288] sm:$0xff]  ;;  %v3049_v29 = vpack.c.bf16 %v1404_v7, %v1403_v5 }
  0xd8   : > { %1056 = vmatmul.mubr.f32.gmra.mrb[40].mxu0 %v3416_v6  ;;  %2998 = vmatprep.subr.bf16.mxu1 %v2997_v3  ;;  %v3013_v61 = vpack.c.bf16 %v1370_v59, %v1369_v54  ;;  %v3045_v3 = vpack.c.bf16 %v1402_v1, %v1401_v62  ;;  %v1376_v54 = vld [vmem:[#allocation4 + $0x2b8] sm:$0xff]  ;;  %v1407_v62 = vld [vmem:[#allocation4 + $0x3b0] sm:$0xff] }
  0xd9   : > { %1217 = vmatmul.mubr.f32.gmra.mrb[40].mxu1 %v3416_v6  ;;  %1061 = vmatprep.mubr.f32.mxu0 %v3421_v14  ;;  %v1334_v6 = vld [vmem:[#allocation4 + $0x168] sm:$0xff]  ;;  %v1408_v1 = vld [vmem:[#allocation4 + $0x3b8] sm:$0xff] }
  0xda   : > { %1222 = vmatprep.mubr.f32.mxu1 %v3421_v14  ;;  %2968 = vmatpush3.bf16.msra.mxu0 %v2967_v10  ;;  %v1351_v14 = vld [vmem:[#allocation4 + $0x1f0] sm:$0xff]  ;;  %v3007_v50 = vpack.c.bf16 %v1334_v6, %v1333_v38  ;;  %v1405_v38 = vld [vmem:[#allocation4 + $0x3a0] sm:$0xff] }
  0xdb   : > { %3000 = vmatpush3.bf16.msra.mxu1 %v2999_v12  ;;  %2970 = vmatprep.subr.bf16.mxu0 %v2969_v15  ;;  %v3009_v35 = vpack.c.bf16 %v1352_v44, %v1351_v14  ;;  %v1355_v15 = vld [vmem:[#allocation4 + $0x210] sm:$0xff]  ;;  %v3051_v14 = vpack.c.bf16 %v1388_v26, %v1387_v25  ;;  %v1357_v44 = vld [vmem:[#allocation4 + $0x220] sm:$0xff] }
  0xdc   : > { %1062 = vmatmul.mubr.f32.gmra.mrb[42].mxu0 %v3426_v23  ;;  %3002 = vmatprep.subr.bf16.mxu1 %v3001_v22  ;;  %v3019_v36 = vpack.c.bf16 %v1356_v16, %v1355_v15 }
  0xdd   : > { %1223 = vmatmul.mubr.f32.gmra.mrb[42].mxu1 %v3426_v23  ;;  %1067 = vmatprep.mubr.f32.mxu0 %v3431_v31  ;;  %v1336_v23 = vld [vmem:[#allocation4 + $0x178] sm:$0xff] }
  0xde   : > { %1228 = vmatprep.mubr.f32.mxu1 %v3431_v31  ;;  %2972 = vmatpush3.bf16.msra.mxu0 %v2971_v13  ;;  %v2979_v31 = vpack.c.bf16 %v1304_v52, %v1303_v51  ;;  %v3011_v60 = vpack.c.bf16 %v1336_v23, %v1335_v53  ;;  %v1373_v13 = vld [vmem:[#allocation4 + $0x2a0] sm:$0xff] }
  0xdf   : > { %3004 = vmatpush3.bf16.msra.mxu1 %v3003_v32  ;;  %2974 = vmatprep.subr.bf16.mxu0 %v2973_v33  ;;  %v1374_v32 = vld [vmem:[#allocation4 + $0x2a8] sm:$0xff]  ;;  %v1389_v52 = vld [vmem:[#allocation4 + $0x320] sm:$0xff] }
  0xe0   : > { %1068 = vmatmul.mubr.f32.gmra.mrb[44].mxu0 %v3436_v39  ;;  %3006 = vmatprep.subr.bf16.mxu1 %v3005_v40  ;;  %v1406_v40 = vld [vmem:[#allocation4 + $0x3a8] sm:$0xff]  ;;  %v3021_v51 = vpack.c.bf16 %v1374_v32, %v1373_v13 }
  0xe1   : > { %1229 = vmatmul.mubr.f32.gmra.mrb[44].mxu1 %v3436_v39  ;;  %1073 = vmatprep.mubr.f32.mxu0 %v3441_v47  ;;  %v605_v39 = vlaneseq  ;;  %v3053_v23 = vpack.c.bf16 %v1406_v40, %v1405_v38 }
  0xe2   : > { %1234 = vmatprep.mubr.f32.mxu1 %v3441_v47  ;;  %2976 = vmatpush3.bf16.msra.mxu0 %v2975_v48  ;;  %v1358_v48 = vld [vmem:[#allocation4 + $0x228] sm:$0xff] }
  0xe3   : > { %3008 = vmatpush3.bf16.msra.mxu1 %v3007_v50  ;;  %2978 = vmatprep.subr.bf16.mxu0 %v2977_v28  ;;  %v3596_v47 = vshrl.u32 %v605_v39, 7 }
  0xe4   : > { %1074 = vmatmul.mubr.f32.gmra.mrb[46].mxu0 %v3446_v55  ;;  %3010 = vmatprep.subr.bf16.mxu1 %v3009_v35  ;;  %v1390_v35 = vld [vmem:[#allocation4 + $0x328] sm:$0xff] }
  0xe5   : > { %1235 = vmatmul.mubr.f32.gmra.mrb[46].mxu1 %v3446_v55  ;;  %1079 = vmatprep.mubr.f32.mxu0 %v3451_v0  ;;  %v615_v55 = vsub.s32 2, %v3596_v47 }
  0xe6   : > { %1240 = vmatprep.mubr.f32.mxu1 %v3451_v0  ;;  %2980 = vmatpush3.bf16.msra.mxu0 %v2979_v31  ;;  %v611_v0 = vsub.s32 1, %v3596_v47  ;;  %v1375_v31 = vld [vmem:[#allocation4 + $0x2b0] sm:$0xff] }
  0xe7   : > { %3012 = vmatpush3.bf16.msra.mxu1 %v3011_v60  ;;  %3014 = vmatprep.subr.bf16.mxu0 %v3013_v61  ;;  %v3023_v61 = vpack.c.bf16 %v1358_v48, %v1357_v44 }
  0xe8   : > { %1080 = vmatmul.mubr.f32.gmra.mrb[48].mxu0 %v3456_v8  ;;  %3046 = vmatprep.subr.bf16.mxu1 %v3045_v3 }
  0xe9   : > { %1241 = vmatmul.mubr.f32.gmra.mrb[48].mxu1 %v3456_v8  ;;  %1085 = vmatprep.mubr.f32.mxu0 %v3461_v18  ;;  %v3603_v8 = vld [vmem:[%s3910_s2] sm:$0xff] }
  0xea   : > { %1246 = vmatprep.mubr.f32.mxu1 %v3461_v18  ;;  %v607_v18 = vsub.s32 0, %v3596_v47 }
  0xec   : > { %1086 = vmatmul.mubr.f32.gmra.mrb[50].mxu0 %v3466_v27 }
  0xed   : > { %1247 = vmatmul.mubr.f32.gmra.mrb[50].mxu1 %v3466_v27  ;;  %1091 = vmatprep.mubr.f32.mxu0 %v3471_v37  ;;  %v619_v27 = vsub.s32 3, %v3596_v47 }
  0xee   : > { %1252 = vmatprep.mubr.f32.mxu1 %v3471_v37  ;;  %v3608_v37 = vrot.slane %v3603_v8, %v615_v55 }
  0xf0   : > { %1092 = vmatmul.mubr.f32.gmra.mrb[52].mxu0 %v3476_v46 }
  0xf1   : > { %1253 = vmatmul.mubr.f32.gmra.mrb[52].mxu1 %v3476_v46  ;;  %1097 = vmatprep.mubr.f32.mxu0 %v3481_v57  ;;  %v3611_v46 = vrot.slane %v3603_v8, %v611_v0  ;;  %v3055_v0 = vpack.c.bf16 %v1390_v35, %v1389_v52 }
  0xf2   : > { %1258 = vmatprep.mubr.f32.mxu1 %v3481_v57  ;;  %v3614_v57 = vrot.slane %v3603_v8, %v607_v18  ;;  %v1359_v18 = vld [vmem:[#allocation4 + $0x230] sm:$0xff] }
  0xf4   : > { %1098 = vmatmul.mubr.f32.gmra.mrb[54].mxu0 %v3486_v2 }
  0xf5   : > { %1259 = vmatmul.mubr.f32.gmra.mrb[54].mxu1 %v3486_v2  ;;  %1103 = vmatprep.mubr.f32.mxu0 %v3491_v11  ;;  %v3617_v2 = vrot.slane %v3603_v8, %v619_v27  ;;  %v1360_v27 = vld [vmem:[#allocation4 + $0x238] sm:$0xff] }
  0xf6   : > { %1264 = vmatprep.mubr.f32.mxu1 %v3491_v11  ;;  %v1353_v11 = vld [vmem:[#allocation4 + $0x200] sm:$0xff] }
  0xf8   : > { %1104 = vmatmul.mubr.f32.gmra.mrb[56].mxu0 %v3496_v24 }
  0xf9   : > { %1265 = vmatmul.mubr.f32.gmra.mrb[56].mxu1 %v3496_v24  ;;  %1109 = vmatprep.mubr.f32.mxu0 %v3501_v34  ;;  %v1354_v24 = vld [vmem:[#allocation4 + $0x208] sm:$0xff] }
  0xfa   : > { %1270 = vmatprep.mubr.f32.mxu1 %v3501_v34  ;;  %v1385_v34 = vld [vmem:[#allocation4 + $0x300] sm:$0xff]  ;;  %v3015_v12 = vpack.c.bf16 %v1354_v24, %v1353_v11 }
  0xfc   : > { %1110 = vmatmul.mubr.f32.gmra.mrb[58].mxu0 %v3506_v45 }
  0xfd   : > { %1271 = vmatmul.mubr.f32.gmra.mrb[58].mxu1 %v3506_v45  ;;  %1115 = vmatprep.mubr.f32.mxu0 %v3511_v58 }
  0xfe   : > { %1276 = vmatprep.mubr.f32.mxu1 %v3511_v58  ;;  %v1386_v58 = vld [vmem:[#allocation4 + $0x308] sm:$0xff] }
  0xff   : > { %v3047_v22 = vpack.c.bf16 %v1386_v58, %v1385_v34  ;;  %v3025_v34 = vpack.c.bf16 %v1376_v54, %v1375_v31  ;;  %v1392_v58 = vld [vmem:[#allocation4 + $0x338] sm:$0xff] }
 0x100   : > { %1116 = vmatmul.mubr.f32.gmra.mrb[60].mxu0 %v3516_v4 }
 0x101   : > { %1277 = vmatmul.mubr.f32.gmra.mrb[60].mxu1 %v3516_v4  ;;  %1121 = vmatprep.mubr.f32.mxu0 %v3521_v17  ;;  %v1371_v4 = vld [vmem:[#allocation4 + $0x290] sm:$0xff] }
 0x102   : > { %1282 = vmatprep.mubr.f32.mxu1 %v3521_v17  ;;  %v1372_v17 = vld [vmem:[#allocation4 + $0x298] sm:$0xff] }
 0x103   : > { %v3017_v56 = vpack.c.bf16 %v1372_v17, %v1371_v4  ;;  %v3057_v17 = vpack.c.bf16 %v1408_v1, %v1407_v62 }
 0x104   : > { %1122 = vmatmul.mubr.f32.gmra.mrb[62].mxu0 %v3526_v30 }
 0x105   : > { %1283 = vmatmul.mubr.f32.gmra.mrb[62].mxu1 %v3526_v30 }
 0x15b   : > { %v711_v45 = vpop.f32.mrb[0].mxu0 }
 0x15c   : > { %v872_v30 = vpop.f32.mrb[0].mxu1  ;;  %v713_v42 = vpop.f32.mrb[1].mxu0  ;;  %v712_v19 = vadd.f32 %v711_v45, %v3614_v57  ;;  %v1391_v45 = vld [vmem:[#allocation4 + $0x330] sm:$0xff] }
 0x15d   : > { %v873_v49 = vadd.f32 %v872_v30, %v3608_v37  ;;  %v714_v9 = vadd.f32 %v713_v42, %v3611_v46  ;;  %v874_v10 = vpop.f32.mrb[1].mxu1  ;;  %v1377_v30 = vld [vmem:[#allocation4 + $0x2c0] sm:$0xff]  ;;  %v1378_v42 = vld [vmem:[#allocation4 + $0x2c8] sm:$0xff] }
 0x15e   : > { %v875_v20 = vadd.f32 %v874_v10, %v3617_v2  ;;  %v1410_v10 = vld [vmem:[#allocation4 + $0x3c8] sm:$0xff]  ;;  %v3029_v26 = vpack.c.bf16 %v1378_v42, %v1377_v30 }
 0x15f   : > { %v717_v63 = vpop.f32.mrb[2].mxu0  ;;  %1488 = vmatprep.mubr.f32.mxu0 %v714_v9  ;;  %v1409_v9 = vld [vmem:[#allocation4 + $0x3c0] sm:$0xff] }
 0x160   : > { %v878_v33 = vpop.f32.mrb[2].mxu1  ;;  %1633 = vmatprep.mubr.f32.mxu1 %v875_v20  ;;  %v719_v21 = vpop.f32.mrb[3].mxu0  ;;  %1489 = vmatmul.mubr.f32.vlgmr.msra.gmra.mrb[64].mxu0 %v712_v19  ;;  %v718_v50 = vadd.f32 %v717_v63, %v3614_v57  ;;  %v3059_v19 = vpack.c.bf16 %v1392_v58, %v1391_v45  ;;  %v1361_v20 = vld [vmem:[#allocation4 + $0x240] sm:$0xff]  ;;  %v3061_v32 = vpack.c.bf16 %v1410_v10, %v1409_v9 }
 0x161   : > { %v879_v6 = vadd.f32 %v878_v33, %v3608_v37  ;;  %v720_v41 = vadd.f32 %v719_v21, %v3611_v46  ;;  %v880_v43 = vpop.f32.mrb[3].mxu1  ;;  %1634 = vmatmul.mubr.f32.vlgmr.msra.gmra.mrb[64].mxu1 %v873_v49  ;;  %3016 = vmatpush3.bf16.msra.mxu0 %v3015_v12  ;;  %v3027_v49 = vpack.c.bf16 %v1360_v27, %v1359_v18  ;;  %v1393_v63 = vld [vmem:[#allocation4 + $0x340] sm:$0xff]  ;;  %v1379_v33 = vld [vmem:[#allocation4 + $0x2d0] sm:$0xff]  ;;  %v1380_v21 = vld [vmem:[#allocation4 + $0x2d8] sm:$0xff] }
 0x162   : > { %v881_v28 = vadd.f32 %v880_v43, %v3617_v2  ;;  %3048 = vmatpush3.bf16.msra.mxu1 %v3047_v22  ;;  %3018 = vmatprep.subr.bf16.mxu0 %v3017_v56  ;;  %v1362_v22 = vld [vmem:[#allocation4 + $0x248] sm:$0xff]  ;;  %v3033_v35 = vpack.c.bf16 %v1380_v21, %v1379_v33  ;;  %v1399_v33 = vld [vmem:[#allocation4 + $0x370] sm:$0xff]  ;;  %v1400_v21 = vld [vmem:[#allocation4 + $0x378] sm:$0xff] }
 0x163   : > { %v723_v53 = vpop.f32.mrb[4].mxu0  ;;  %1493 = vmatprep.mubr.f32.mxu0 %v720_v41  ;;  %3050 = vmatprep.subr.bf16.mxu1 %v3049_v29  ;;  %v1394_v29 = vld [vmem:[#allocation4 + $0x348] sm:$0xff]  ;;  %v3031_v40 = vpack.c.bf16 %v1362_v22, %v1361_v20  ;;  %v1412_v41 = vld [vmem:[#allocation4 + $0x3d8] sm:$0xff] }
 0x164   : > { %v884_v59 = vpop.f32.mrb[4].mxu1  ;;  %1638 = vmatprep.mubr.f32.mxu1 %v881_v28  ;;  %v725_v60 = vpop.f32.mrb[5].mxu0  ;;  %1494 = vmatmul.mubr.f32.gmra.mrb[66].mxu0 %v718_v50  ;;  %v724_v11 = vadd.f32 %v723_v53, %v3614_v57  ;;  %v3063_v48 = vpack.c.bf16 %v1394_v29, %v1393_v63  ;;  %v1363_v50 = vld [vmem:[#allocation4 + $0x250] sm:$0xff]  ;;  %v1364_v28 = vld [vmem:[#allocation4 + $0x258] sm:$0xff] }
 0x165   : > { %v885_v3 = vadd.f32 %v884_v59, %v3608_v37  ;;  %v726_v39 = vadd.f32 %v725_v60, %v3611_v46  ;;  %v886_v55 = vpop.f32.mrb[5].mxu1  ;;  %1639 = vmatmul.mubr.f32.gmra.mrb[66].mxu1 %v879_v6  ;;  %3020 = vmatpush3.bf16.msra.mxu0 %v3019_v36  ;;  %v1411_v6 = vld [vmem:[#allocation4 + $0x3d0] sm:$0xff]  ;;  %v1381_v59 = vld [vmem:[#allocation4 + $0x2e0] sm:$0xff]  ;;  %v1382_v60 = vld [vmem:[#allocation4 + $0x2e8] sm:$0xff]  ;;  %v3035_v1 = vpack.c.bf16 %v1364_v28, %v1363_v50 }
 0x166   : > { %v887_v24 = vadd.f32 %v886_v55, %v3617_v2  ;;  %3052 = vmatpush3.bf16.msra.mxu1 %v3051_v14  ;;  %3022 = vmatprep.subr.bf16.mxu0 %v3021_v51  ;;  %v1395_v53 = vld [vmem:[#allocation4 + $0x350] sm:$0xff]  ;;  %v3065_v54 = vpack.c.bf16 %v1412_v41, %v1411_v6  ;;  %v3037_v58 = vpack.c.bf16 %v1382_v60, %v1381_v59  ;;  %v1368_v29 = vld [vmem:[#allocation4 + $0x278] sm:$0xff] }
 0x167   : > { %v729_v4 = vpop.f32.mrb[6].mxu0  ;;  %1498 = vmatprep.mubr.f32.mxu0 %v726_v39  ;;  %3054 = vmatprep.subr.bf16.mxu1 %v3053_v23  ;;  %v1396_v23 = vld [vmem:[#allocation4 + $0x358] sm:$0xff]  ;;  %v1414_v39 = vld [vmem:[#allocation4 + $0x3e8] sm:$0xff]  ;;  %v1367_v63 = vld [vmem:[#allocation4 + $0x270] sm:$0xff] }
 0x168   : > { %v890_v5 = vpop.f32.mrb[6].mxu1  ;;  %1643 = vmatprep.mubr.f32.mxu1 %v887_v24  ;;  %v731_v7 = vpop.f32.mrb[7].mxu0  ;;  %1499 = vmatmul.mubr.f32.gmra.mrb[68].mxu0 %v724_v11  ;;  %v730_v56 = vadd.f32 %v729_v4, %v3614_v57  ;;  %v3067_v27 = vpack.c.bf16 %v1396_v23, %v1395_v53  ;;  %v1365_v11 = vld [vmem:[#allocation4 + $0x260] sm:$0xff]  ;;  %v1366_v24 = vld [vmem:[#allocation4 + $0x268] sm:$0xff] }
 0x169   : > { %v891_v12 = vadd.f32 %v890_v5, %v3608_v37  ;;  %v732_v15 = vadd.f32 %v731_v7, %v3611_v46  ;;  %v892_v16 = vpop.f32.mrb[7].mxu1  ;;  %1644 = vmatmul.mubr.f32.gmra.mrb[68].mxu1 %v885_v3  ;;  %3024 = vmatpush3.bf16.msra.mxu0 %v3023_v61  ;;  %v1413_v3 = vld [vmem:[#allocation4 + $0x3e0] sm:$0xff]  ;;  %v1383_v5 = vld [vmem:[#allocation4 + $0x2f0] sm:$0xff]  ;;  %v1384_v7 = vld [vmem:[#allocation4 + $0x2f8] sm:$0xff]  ;;  %v3039_v10 = vpack.c.bf16 %v1366_v24, %v1365_v11 }
 0x16a   : > { %v893_v25 = vadd.f32 %v892_v16, %v3617_v2  ;;  %3056 = vmatpush3.bf16.msra.mxu1 %v3055_v0  ;;  %3026 = vmatprep.subr.bf16.mxu0 %v3025_v34  ;;  %v1397_v4 = vld [vmem:[#allocation4 + $0x360] sm:$0xff]  ;;  %v3069_v42 = vpack.c.bf16 %v1414_v39, %v1413_v3 }
 0x16b   : > { %v735_v13 = vpop.f32.mrb[8].mxu0  ;;  %1503 = vmatprep.mubr.f32.mxu0 %v732_v15  ;;  %3058 = vmatprep.subr.bf16.mxu1 %v3057_v17  ;;  %v1398_v17 = vld [vmem:[#allocation4 + $0x368] sm:$0xff]  ;;  %v1416_v15 = vld [vmem:[#allocation4 + $0x3f8] sm:$0xff] }
 0x16c   : > { %v896_v36 = vpop.f32.mrb[8].mxu1  ;;  %1648 = vmatprep.mubr.f32.mxu1 %v893_v25  ;;  %v737_v38 = vpop.f32.mrb[9].mxu0  ;;  %1504 = vmatmul.mubr.f32.gmra.mrb[70].mxu0 %v730_v56  ;;  %v736_v51 = vadd.f32 %v735_v13, %v3614_v57  ;;  %v3071_v22 = vpack.c.bf16 %v1398_v17, %v1397_v4 }
 0x16d   : > { %v897_v43 = vadd.f32 %v896_v36, %v3608_v37  ;;  %v738_v14 = vadd.f32 %v737_v38, %v3611_v46  ;;  %v898_v44 = vpop.f32.mrb[9].mxu1  ;;  %1649 = vmatmul.mubr.f32.gmra.mrb[70].mxu1 %v891_v12  ;;  %3028 = vmatpush3.bf16.msra.mxu0 %v3027_v49  ;;  %v1415_v12 = vld [vmem:[#allocation4 + $0x3f0] sm:$0xff] }
 0x16e   : > { %v899_v52 = vadd.f32 %v898_v44, %v3617_v2  ;;  %3060 = vmatpush3.bf16.msra.mxu1 %v3059_v19  ;;  %3030 = vmatprep.subr.bf16.mxu0 %v3029_v26  ;;  %v3041_v26 = vpack.c.bf16 %v1384_v7, %v1383_v5 }
 0x16f   : > { %v741_v31 = vpop.f32.mrb[10].mxu0  ;;  %1508 = vmatprep.mubr.f32.mxu0 %v738_v14  ;;  %3062 = vmatprep.subr.bf16.mxu1 %v3061_v32  ;;  %v3073_v32 = vpack.c.bf16 %v1416_v15, %v1415_v12 }
 0x170   : > { %v902_v61 = vpop.f32.mrb[10].mxu1  ;;  %1653 = vmatprep.mubr.f32.mxu1 %v899_v52  ;;  %v743_v62 = vpop.f32.mrb[11].mxu0  ;;  %1509 = vmatmul.mubr.f32.gmra.mrb[72].mxu0 %v736_v51  ;;  %v742_v34 = vadd.f32 %v741_v31, %v3614_v57 }
 0x171   : > { %v903_v55 = vadd.f32 %v902_v61, %v3608_v37  ;;  %v744_v0 = vadd.f32 %v743_v62, %v3611_v46  ;;  %v904_v18 = vpop.f32.mrb[11].mxu1  ;;  %1654 = vmatmul.mubr.f32.gmra.mrb[72].mxu1 %v897_v43  ;;  %3032 = vmatpush3.bf16.msra.mxu0 %v3031_v40  ;;  %v3043_v43 = vpack.c.bf16 %v1368_v29, %v1367_v63 }
 0x172   : > { %v905_v45 = vadd.f32 %v904_v18, %v3617_v2  ;;  %3064 = vmatpush3.bf16.msra.mxu1 %v3063_v48  ;;  %3034 = vmatprep.subr.bf16.mxu0 %v3033_v35  ;;  %v3075_v48 = vpack.c.bf16 %v1400_v21, %v1399_v33 }
 0x173   : > { %v747_v30 = vpop.f32.mrb[12].mxu0  ;;  %1513 = vmatprep.mubr.f32.mxu0 %v744_v0  ;;  %3066 = vmatprep.subr.bf16.mxu1 %v3065_v54 }
 0x174   : > { %v908_v49 = vpop.f32.mrb[12].mxu1  ;;  %1658 = vmatprep.mubr.f32.mxu1 %v905_v45  ;;  %v749_v9 = vpop.f32.mrb[13].mxu0  ;;  %1514 = vmatmul.mubr.f32.gmra.mrb[74].mxu0 %v742_v34  ;;  %v748_v56 = vadd.f32 %v747_v30, %v3614_v57 }
 0x175   : > { %v909_v16 = vadd.f32 %v908_v49, %v3608_v37  ;;  %v750_v19 = vadd.f32 %v749_v9, %v3611_v46  ;;  %v910_v20 = vpop.f32.mrb[13].mxu1  ;;  %1659 = vmatmul.mubr.f32.gmra.mrb[74].mxu1 %v903_v55  ;;  %3036 = vmatpush3.bf16.msra.mxu0 %v3035_v1 }
 0x176   : > { %v911_v25 = vadd.f32 %v910_v20, %v3617_v2  ;;  %3068 = vmatpush3.bf16.msra.mxu1 %v3067_v27  ;;  %3038 = vmatprep.subr.bf16.mxu0 %v3037_v58 }
 0x177   : > { %v753_v13 = vpop.f32.mrb[14].mxu0  ;;  %1518 = vmatprep.mubr.f32.mxu0 %v750_v19  ;;  %3070 = vmatprep.subr.bf16.mxu1 %v3069_v42 }
 0x178   : > { %v914_v36 = vpop.f32.mrb[14].mxu1  ;;  %1663 = vmatprep.mubr.f32.mxu1 %v911_v25  ;;  %v755_v38 = vpop.f32.mrb[15].mxu0  ;;  %1519 = vmatmul.mubr.f32.gmra.mrb[76].mxu0 %v748_v56  ;;  %v754_v14 = vadd.f32 %v753_v13, %v3614_v57 }
 0x179   : > { %v915_v40 = vadd.f32 %v914_v36, %v3608_v37  ;;  %v756_v6 = vadd.f32 %v755_v38, %v3611_v46  ;;  %v916_v41 = vpop.f32.mrb[15].mxu1  ;;  %1664 = vmatmul.mubr.f32.gmra.mrb[76].mxu1 %v909_v16  ;;  %3040 = vmatpush3.bf16.msra.mxu0 %v3039_v10 }
 0x17a   : > { %v917_v44 = vadd.f32 %v916_v41, %v3617_v2  ;;  %3072 = vmatpush3.bf16.msra.mxu1 %v3071_v22  ;;  %3042 = vmatprep.subr.bf16.mxu0 %v3041_v26 }
 0x17b   : > { %v759_v50 = vpop.f32.mrb[16].mxu0  ;;  %1523 = vmatprep.mubr.f32.mxu0 %v756_v6  ;;  %3074 = vmatprep.subr.bf16.mxu1 %v3073_v32 }
 0x17c   : > { %v920_v28 = vpop.f32.mrb[16].mxu1  ;;  %1668 = vmatprep.mubr.f32.mxu1 %v917_v44  ;;  %v761_v51 = vpop.f32.mrb[17].mxu0  ;;  %1524 = vmatmul.mubr.f32.gmra.mrb[78].mxu0 %v754_v14  ;;  %v760_v23 = vadd.f32 %v759_v50, %v3614_v57  ;;  %v627_v14 = vsub.s32 5, %v3596_v47  ;;  %v623_v50 = vsub.s32 4, %v3596_v47 }
 0x17d   : > { %v921_v52 = vadd.f32 %v920_v28, %v3608_v37  ;;  %v762_v35 = vadd.f32 %v761_v51, %v3611_v46  ;;  %v922_v53 = vpop.f32.mrb[17].mxu1  ;;  %1669 = vmatmul.mubr.f32.gmra.mrb[78].mxu1 %v915_v40  ;;  %3044 = vmatpush3.bf16.msra.mxu0 %v3043_v43  ;;  %v631_v43 = vsub.s32 6, %v3596_v47  ;;  %v635_v28 = vsub.s32 7, %v3596_v47 }
 0x17e   : > { %v923_v31 = vadd.f32 %v922_v53, %v3617_v2  ;;  %3076 = vmatpush3.bf16.msra.mxu1 %v3075_v48 }
 0x17f   : > { %v765_v54 = vpop.f32.mrb[18].mxu0  ;;  %1528 = vmatprep.mubr.f32.mxu0 %v762_v35 }
 0x180   : > { %v926_v59 = vpop.f32.mrb[18].mxu1  ;;  %1673 = vmatprep.mubr.f32.mxu1 %v923_v31  ;;  %v767_v60 = vpop.f32.mrb[19].mxu0  ;;  %1529 = vmatmul.mubr.f32.gmra.mrb[80].mxu0 %v760_v23  ;;  %v766_v3 = vadd.f32 %v765_v54, %v3614_v57  ;;  %v3686_v54 = vrot.slane %v3603_v8, %v631_v43 }
 0x181   : > { %v927_v61 = vadd.f32 %v926_v59, %v3608_v37  ;;  %v768_v62 = vadd.f32 %v767_v60, %v3611_v46  ;;  %v928_v1 = vpop.f32.mrb[19].mxu1  ;;  %1674 = vmatmul.mubr.f32.gmra.mrb[80].mxu1 %v921_v52  ;;  %v3689_v59 = vrot.slane %v3603_v8, %v627_v14 }
 0x182   : > { %v929_v39 = vadd.f32 %v928_v1, %v3617_v2 }
 0x183   : > { %v771_v55 = vpop.f32.mrb[20].mxu0  ;;  %1533 = vmatprep.mubr.f32.mxu0 %v768_v62  ;;  %v3697_v62 = vrot.slane %v3603_v8, %v635_v28 }
 0x184   : > { %v932_v0 = vpop.f32.mrb[20].mxu1  ;;  %1678 = vmatprep.mubr.f32.mxu1 %v929_v39  ;;  %v773_v18 = vpop.f32.mrb[21].mxu0  ;;  %1534 = vmatmul.mubr.f32.gmra.mrb[82].mxu0 %v766_v3  ;;  %v772_v34 = vadd.f32 %v771_v55, %v3614_v57 }
 0x185   : > { %v933_v27 = vadd.f32 %v932_v0, %v3608_v37  ;;  %v774_v11 = vadd.f32 %v773_v18, %v3611_v46  ;;  %v934_v24 = vpop.f32.mrb[21].mxu1  ;;  %1679 = vmatmul.mubr.f32.gmra.mrb[82].mxu1 %v927_v61  ;;  %v3694_v61 = vrot.slane %v3603_v8, %v623_v50 }
 0x186   : > { %v935_v45 = vadd.f32 %v934_v24, %v3617_v2 }
 0x187   : > { %v777_v58 = vpop.f32.mrb[22].mxu0  ;;  %1538 = vmatprep.mubr.f32.mxu0 %v774_v11 }
 0x188   : > { %v938_v4 = vpop.f32.mrb[22].mxu1  ;;  %1683 = vmatprep.mubr.f32.mxu1 %v935_v45  ;;  %v779_v17 = vpop.f32.mrb[23].mxu0  ;;  %1539 = vmatmul.mubr.f32.gmra.mrb[84].mxu0 %v772_v34  ;;  %v778_v7 = vadd.f32 %v777_v58, %v3614_v57 }
 0x189   : > { %v939_v30 = vadd.f32 %v938_v4, %v3608_v37  ;;  %v780_v42 = vadd.f32 %v779_v17, %v3611_v46  ;;  %v940_v5 = vpop.f32.mrb[23].mxu1  ;;  %1684 = vmatmul.mubr.f32.gmra.mrb[84].mxu1 %v933_v27 }
 0x18a   : > { %v941_v49 = vadd.f32 %v940_v5, %v3617_v2 }
 0x18b   : > { %v783_v9 = vpop.f32.mrb[24].mxu0  ;;  %1543 = vmatprep.mubr.f32.mxu0 %v780_v42 }
 0x18c   : > { %v944_v10 = vpop.f32.mrb[24].mxu1  ;;  %1688 = vmatprep.mubr.f32.mxu1 %v941_v49  ;;  %v785_v12 = vpop.f32.mrb[25].mxu0  ;;  %1544 = vmatmul.mubr.f32.gmra.mrb[86].mxu0 %v778_v7  ;;  %v784_v20 = vadd.f32 %v783_v9, %v3614_v57 }
 0x18d   : > { %v945_v15 = vadd.f32 %v944_v10, %v3608_v37  ;;  %v786_v16 = vadd.f32 %v785_v12, %v3611_v46  ;;  %v946_v19 = vpop.f32.mrb[25].mxu1  ;;  %1689 = vmatmul.mubr.f32.gmra.mrb[86].mxu1 %v939_v30 }
 0x18e   : > { %v947_v22 = vadd.f32 %v946_v19, %v3617_v2 }
 0x18f   : > { %v789_v56 = vpop.f32.mrb[26].mxu0  ;;  %1548 = vmatprep.mubr.f32.mxu0 %v786_v16 }
 0x190   : > { %v950_v25 = vpop.f32.mrb[26].mxu1  ;;  %1693 = vmatprep.mubr.f32.mxu1 %v947_v22  ;;  %v791_v26 = vpop.f32.mrb[27].mxu0  ;;  %1549 = vmatmul.mubr.f32.gmra.mrb[88].mxu0 %v784_v20  ;;  %v790_v32 = vadd.f32 %v789_v56, %v3614_v57 }
 0x191   : > { %v951_v63 = vadd.f32 %v950_v25, %v3608_v37  ;;  %v792_v29 = vadd.f32 %v791_v26, %v3611_v46  ;;  %v952_v13 = vpop.f32.mrb[27].mxu1  ;;  %1694 = vmatmul.mubr.f32.gmra.mrb[88].mxu1 %v945_v15 }
 0x192   : > { %v953_v33 = vadd.f32 %v952_v13, %v3617_v2 }
 0x193   : > { %v795_v21 = vpop.f32.mrb[28].mxu0  ;;  %1553 = vmatprep.mubr.f32.mxu0 %v792_v29 }
 0x194   : > { %v956_v36 = vpop.f32.mrb[28].mxu1  ;;  %1698 = vmatprep.mubr.f32.mxu1 %v953_v33  ;;  %v797_v38 = vpop.f32.mrb[29].mxu0  ;;  %1554 = vmatmul.mubr.f32.gmra.mrb[90].mxu0 %v790_v32  ;;  %v796_v44 = vadd.f32 %v795_v21, %v3614_v57 }
 0x195   : > { %v957_v40 = vadd.f32 %v956_v36, %v3608_v37  ;;  %v798_v6 = vadd.f32 %v797_v38, %v3611_v46  ;;  %v958_v41 = vpop.f32.mrb[29].mxu1  ;;  %1699 = vmatmul.mubr.f32.gmra.mrb[90].mxu1 %v951_v63 }
 0x196   : > { %v959_v48 = vadd.f32 %v958_v41, %v3617_v2 }
 0x197   : > { %v801_v51 = vpop.f32.mrb[30].mxu0  ;;  %1558 = vmatprep.mubr.f32.mxu0 %v798_v6 }
 0x198   : > { %v962_v52 = vpop.f32.mrb[30].mxu1  ;;  %1703 = vmatprep.mubr.f32.mxu1 %v959_v48  ;;  %v803_v35 = vpop.f32.mrb[31].mxu0  ;;  %1559 = vmatmul.mubr.f32.gmra.mrb[92].mxu0 %v796_v44  ;;  %v802_v47 = vadd.f32 %v801_v51, %v3614_v57 }
 0x199   : > { %v963_v53 = vadd.f32 %v962_v52, %v3608_v37  ;;  %v804_v23 = vadd.f32 %v803_v35, %v3611_v46  ;;  %v964_v31 = vpop.f32.mrb[31].mxu1  ;;  %1704 = vmatmul.mubr.f32.gmra.mrb[92].mxu1 %v957_v40 }
 0x19a   : > { %v965_v60 = vadd.f32 %v964_v31, %v3617_v2 }
 0x19b   : > { %v1033_v37 = vpop.f32.mrb[32].mxu0  ;;  %1563 = vmatprep.mubr.f32.mxu0 %v804_v23 }
 0x19c   : > { %v1194_v46 = vpop.f32.mrb[32].mxu1  ;;  %1708 = vmatprep.mubr.f32.mxu1 %v965_v60  ;;  %v1035_v1 = vpop.f32.mrb[33].mxu0  ;;  %1564 = vmatmul.mubr.f32.gmra.mrb[94].mxu0 %v802_v47  ;;  %v1034_v57 = vadd.f32 %v1033_v37, %v3694_v61 }
 0x19d   : > { %v1195_v3 = vadd.f32 %v1194_v46, %v3686_v54  ;;  %v1036_v39 = vadd.f32 %v1035_v1, %v3689_v59  ;;  %v1196_v55 = vpop.f32.mrb[33].mxu1  ;;  %1709 = vmatmul.mubr.f32.gmra.mrb[94].mxu1 %v963_v53 }
 0x19e   : > { %v1197_v2 = vadd.f32 %v1196_v55, %v3697_v62 }
 0x19f   : > { %v1039_v0 = vpop.f32.mrb[34].mxu0  ;;  %1778 = vmatprep.mubr.f32.mxu0 %v1036_v39 }
 0x1a0   : > { %v1200_v8 = vpop.f32.mrb[34].mxu1  ;;  %1923 = vmatprep.mubr.f32.mxu1 %v1197_v2  ;;  %v1041_v18 = vpop.f32.mrb[35].mxu0  ;;  %1779 = vmatmul.mubr.f32.vlgmr.msra.gmra.mrb[96].mxu0 %v1034_v57  ;;  %v1040_v34 = vadd.f32 %v1039_v0, %v3694_v61 }
 0x1a1   : > { %v1201_v27 = vadd.f32 %v1200_v8, %v3686_v54  ;;  %v1042_v11 = vadd.f32 %v1041_v18, %v3689_v59  ;;  %v1202_v24 = vpop.f32.mrb[35].mxu1  ;;  %1924 = vmatmul.mubr.f32.vlgmr.msra.gmra.mrb[96].mxu1 %v1195_v3 }
 0x1a2   : > { %v1203_v45 = vadd.f32 %v1202_v24, %v3697_v62 }
 0x1a3   : > { %v1045_v58 = vpop.f32.mrb[36].mxu0  ;;  %1783 = vmatprep.mubr.f32.mxu0 %v1042_v11 }
 0x1a4   : > { %v1206_v4 = vpop.f32.mrb[36].mxu1  ;;  %1928 = vmatprep.mubr.f32.mxu1 %v1203_v45  ;;  %v1047_v17 = vpop.f32.mrb[37].mxu0  ;;  %1784 = vmatmul.mubr.f32.gmra.mrb[98].mxu0 %v1040_v34  ;;  %v1046_v7 = vadd.f32 %v1045_v58, %v3694_v61 }
 0x1a5   : > { %v1207_v30 = vadd.f32 %v1206_v4, %v3686_v54  ;;  %v1048_v42 = vadd.f32 %v1047_v17, %v3689_v59  ;;  %v1208_v5 = vpop.f32.mrb[37].mxu1  ;;  %1929 = vmatmul.mubr.f32.gmra.mrb[98].mxu1 %v1201_v27 }
 0x1a6   : > { %v1209_v49 = vadd.f32 %v1208_v5, %v3697_v62 }
 0x1a7   : > { %v1051_v9 = vpop.f32.mrb[38].mxu0  ;;  %1788 = vmatprep.mubr.f32.mxu0 %v1048_v42 }
 0x1a8   : > { %v1212_v10 = vpop.f32.mrb[38].mxu1  ;;  %1933 = vmatprep.mubr.f32.mxu1 %v1209_v49  ;;  %v1053_v12 = vpop.f32.mrb[39].mxu0  ;;  %1789 = vmatmul.mubr.f32.gmra.mrb[100].mxu0 %v1046_v7  ;;  %v1052_v20 = vadd.f32 %v1051_v9, %v3694_v61 }
 0x1a9   : > { %v1213_v15 = vadd.f32 %v1212_v10, %v3686_v54  ;;  %v1054_v16 = vadd.f32 %v1053_v12, %v3689_v59  ;;  %v1214_v19 = vpop.f32.mrb[39].mxu1  ;;  %1934 = vmatmul.mubr.f32.gmra.mrb[100].mxu1 %v1207_v30 }
 0x1aa   : > { %v1215_v22 = vadd.f32 %v1214_v19, %v3697_v62 }
 0x1ab   : > { %v1057_v56 = vpop.f32.mrb[40].mxu0  ;;  %1793 = vmatprep.mubr.f32.mxu0 %v1054_v16 }
 0x1ac   : > { %v1218_v25 = vpop.f32.mrb[40].mxu1  ;;  %1938 = vmatprep.mubr.f32.mxu1 %v1215_v22  ;;  %v1059_v26 = vpop.f32.mrb[41].mxu0  ;;  %1794 = vmatmul.mubr.f32.gmra.mrb[102].mxu0 %v1052_v20  ;;  %v1058_v32 = vadd.f32 %v1057_v56, %v3694_v61 }
 0x1ad   : > { %v1219_v63 = vadd.f32 %v1218_v25, %v3686_v54  ;;  %v1060_v29 = vadd.f32 %v1059_v26, %v3689_v59  ;;  %v1220_v13 = vpop.f32.mrb[41].mxu1  ;;  %1939 = vmatmul.mubr.f32.gmra.mrb[102].mxu1 %v1213_v15 }
 0x1ae   : > { %v1221_v33 = vadd.f32 %v1220_v13, %v3697_v62 }
 0x1af   : > { %v1063_v21 = vpop.f32.mrb[42].mxu0  ;;  %1798 = vmatprep.mubr.f32.mxu0 %v1060_v29 }
 0x1b0   : > { %v1224_v36 = vpop.f32.mrb[42].mxu1  ;;  %1943 = vmatprep.mubr.f32.mxu1 %v1221_v33  ;;  %v1065_v38 = vpop.f32.mrb[43].mxu0  ;;  %1799 = vmatmul.mubr.f32.gmra.mrb[104].mxu0 %v1058_v32  ;;  %v1064_v43 = vadd.f32 %v1063_v21, %v3694_v61 }
 0x1b1   : > { %v1225_v40 = vadd.f32 %v1224_v36, %v3686_v54  ;;  %v1066_v6 = vadd.f32 %v1065_v38, %v3689_v59  ;;  %v1226_v41 = vpop.f32.mrb[43].mxu1  ;;  %1944 = vmatmul.mubr.f32.gmra.mrb[104].mxu1 %v1219_v63 }
 0x1b2   : > { %v1227_v14 = vadd.f32 %v1226_v41, %v3697_v62 }
 0x1b3   : > { %v1069_v44 = vpop.f32.mrb[44].mxu0  ;;  %1803 = vmatprep.mubr.f32.mxu0 %v1066_v6 }
 0x1b4   : > { %v1230_v48 = vpop.f32.mrb[44].mxu1  ;;  %1948 = vmatprep.mubr.f32.mxu1 %v1227_v14  ;;  %v1071_v50 = vpop.f32.mrb[45].mxu0  ;;  %1804 = vmatmul.mubr.f32.gmra.mrb[106].mxu0 %v1064_v43  ;;  %v1070_v35 = vadd.f32 %v1069_v44, %v3694_v61 }
 0x1b5   : > { %v1231_v28 = vadd.f32 %v1230_v48, %v3686_v54  ;;  %v1072_v51 = vadd.f32 %v1071_v50, %v3689_v59  ;;  %v1232_v52 = vpop.f32.mrb[45].mxu1  ;;  %1949 = vmatmul.mubr.f32.gmra.mrb[106].mxu1 %v1225_v40 }
 0x1b6   : > { %v1233_v53 = vadd.f32 %v1232_v52, %v3697_v62 }
 0x1b7   : > { %v1075_v23 = vpop.f32.mrb[46].mxu0  ;;  %1808 = vmatprep.mubr.f32.mxu0 %v1072_v51 }
 0x1b8   : > { %v1236_v31 = vpop.f32.mrb[46].mxu1  ;;  %1953 = vmatprep.mubr.f32.mxu1 %v1233_v53  ;;  %v1077_v47 = vpop.f32.mrb[47].mxu0  ;;  %1809 = vmatmul.mubr.f32.gmra.mrb[108].mxu0 %v1070_v35  ;;  %v1076_v1 = vadd.f32 %v1075_v23, %v3694_v61 }
 0x1b9   : > { %v1237_v60 = vadd.f32 %v1236_v31, %v3686_v54  ;;  %v1078_v37 = vadd.f32 %v1077_v47, %v3689_v59  ;;  %v1238_v46 = vpop.f32.mrb[47].mxu1  ;;  %1954 = vmatmul.mubr.f32.gmra.mrb[108].mxu1 %v1231_v28 }
 0x1ba   : > { %v1239_v3 = vadd.f32 %v1238_v46, %v3697_v62 }
 0x1bb   : > { %v1081_v39 = vpop.f32.mrb[48].mxu0  ;;  %1813 = vmatprep.mubr.f32.mxu0 %v1078_v37 }
 0x1bc   : > { %v1242_v55 = vpop.f32.mrb[48].mxu1  ;;  %1958 = vmatprep.mubr.f32.mxu1 %v1239_v3  ;;  %v1083_v57 = vpop.f32.mrb[49].mxu0  ;;  %1814 = vmatmul.mubr.f32.gmra.mrb[110].mxu0 %v1076_v1  ;;  %v1082_v18 = vadd.f32 %v1081_v39, %v3694_v61 }
 0x1bd   : > { %v1243_v2 = vadd.f32 %v1242_v55, %v3686_v54  ;;  %v1084_v0 = vadd.f32 %v1083_v57, %v3689_v59  ;;  %v1244_v8 = vpop.f32.mrb[49].mxu1  ;;  %1959 = vmatmul.mubr.f32.gmra.mrb[110].mxu1 %v1237_v60 }
 0x1be   : > { %v1245_v27 = vadd.f32 %v1244_v8, %v3697_v62 }
 0x1bf   : > { %v1087_v11 = vpop.f32.mrb[50].mxu0  ;;  %1818 = vmatprep.mubr.f32.mxu0 %v1084_v0  ;;  %v2004_v0 = vld [vmem:[%s3913_s5] sm:$0xff] }
 0x1c0   : > { %v1248_v24 = vpop.f32.mrb[50].mxu1  ;;  %1963 = vmatprep.mubr.f32.mxu1 %v1245_v27  ;;  %v1089_v34 = vpop.f32.mrb[51].mxu0  ;;  %1819 = vmatmul.mubr.f32.gmra.mrb[112].mxu0 %v1082_v18  ;;  %v1088_v17 = vadd.f32 %v1087_v11, %v3694_v61  ;;  %v2008_v18 = vld [vmem:[%s3913_s5 + $0x20] sm:$0xff]  ;;  %v2009_v27 = vld [vmem:[%s3913_s5 + $0x28] sm:$0xff] }
 0x1c1   : > { %v1249_v45 = vadd.f32 %v1248_v24, %v3686_v54  ;;  %v1090_v58 = vadd.f32 %v1089_v34, %v3689_v59  ;;  %v1250_v4 = vpop.f32.mrb[51].mxu1  ;;  %1964 = vmatmul.mubr.f32.gmra.mrb[112].mxu1 %v1243_v2  ;;  %v3085_v11 = vpack.c.bf16 %v2009_v27, %v2008_v18  ;;  %v2010_v24 = vld [vmem:[%s3913_s5 + $0x30] sm:$0xff]  ;;  %v2011_v34 = vld [vmem:[%s3913_s5 + $0x38] sm:$0xff] }
 0x1c2   : > { %v1251_v30 = vadd.f32 %v1250_v4, %v3697_v62  ;;  %v2013_v4 = vld [vmem:[%s3913_s5 + $0x48] sm:$0xff] }
 0x1c3   : > { %v1093_v42 = vpop.f32.mrb[52].mxu0  ;;  %1823 = vmatprep.mubr.f32.mxu0 %v1090_v58  ;;  %v2012_v58 = vld [vmem:[%s3913_s5 + $0x40] sm:$0xff] }
 0x1c4   : > { %v1254_v5 = vpop.f32.mrb[52].mxu1  ;;  %1968 = vmatprep.mubr.f32.mxu1 %v1251_v30  ;;  %v1095_v7 = vpop.f32.mrb[53].mxu0  ;;  %1824 = vmatmul.mubr.f32.gmra.mrb[114].mxu0 %v1088_v17  ;;  %v1094_v12 = vadd.f32 %v1093_v42, %v3694_v61  ;;  %v3093_v17 = vpack.c.bf16 %v2013_v4, %v2012_v58  ;;  %v2014_v30 = vld [vmem:[%s3913_s5 + $0x50] sm:$0xff]  ;;  %v2015_v42 = vld [vmem:[%s3913_s5 + $0x58] sm:$0xff] }
 0x1c5   : > { %v1255_v49 = vadd.f32 %v1254_v5, %v3686_v54  ;;  %v1096_v9 = vadd.f32 %v1095_v7, %v3689_v59  ;;  %v1256_v10 = vpop.f32.mrb[53].mxu1  ;;  %1969 = vmatmul.mubr.f32.gmra.mrb[114].mxu1 %v1249_v45  ;;  %v3089_v45 = vpack.c.bf16 %v2011_v34, %v2010_v24  ;;  %v3097_v5 = vpack.c.bf16 %v2015_v42, %v2014_v30  ;;  %v2016_v7 = vld [vmem:[%s3913_s5 + $0x60] sm:$0xff] }
 0x1c6   : > { %v1257_v15 = vadd.f32 %v1256_v10, %v3697_v62  ;;  %v2018_v10 = vld [vmem:[%s3913_s5 + $0x70] sm:$0xff] }
 0x1c7   : > { %v1099_v16 = vpop.f32.mrb[54].mxu0  ;;  %1828 = vmatprep.mubr.f32.mxu0 %v1096_v9 }
 0x1c8   : > { %v1260_v19 = vpop.f32.mrb[54].mxu1  ;;  %1973 = vmatprep.mubr.f32.mxu1 %v1257_v15  ;;  %v1101_v20 = vpop.f32.mrb[55].mxu0  ;;  %1829 = vmatmul.mubr.f32.gmra.mrb[116].mxu0 %v1094_v12  ;;  %v1100_v26 = vadd.f32 %v1099_v16, %v3694_v61  ;;  %v2019_v12 = vld [vmem:[%s3913_s5 + $0x78] sm:$0xff] }
 0x1c9   : > { %v1261_v22 = vadd.f32 %v1260_v19, %v3686_v54  ;;  %v1102_v56 = vadd.f32 %v1101_v20, %v3689_v59  ;;  %v1262_v25 = vpop.f32.mrb[55].mxu1  ;;  %1974 = vmatmul.mubr.f32.gmra.mrb[116].mxu1 %v1255_v49  ;;  %v2017_v49 = vld [vmem:[%s3913_s5 + $0x68] sm:$0xff]  ;;  %v3105_v15 = vpack.c.bf16 %v2019_v12, %v2018_v10  ;;  %v3814_v20 = vld [vmem:[%s3912_s4] ss:$0 sm:$0xff] }
 0x1ca   : > { %v1263_v63 = vadd.f32 %v1262_v25, %v3697_v62  ;;  %v3101_v9 = vpack.c.bf16 %v2017_v49, %v2016_v7 }
 0x1cb   : > { %v1105_v29 = vpop.f32.mrb[56].mxu0  ;;  %1833 = vmatprep.mubr.f32.mxu0 %v1102_v56 }
 0x1cc   : > { %v1266_v13 = vpop.f32.mrb[56].mxu1  ;;  %1978 = vmatprep.mubr.f32.mxu1 %v1263_v63  ;;  %v1107_v32 = vpop.f32.mrb[57].mxu0  ;;  %1834 = vmatmul.mubr.f32.gmra.mrb[118].mxu0 %v1100_v26  ;;  %v1106_v38 = vadd.f32 %v1105_v29, %v3694_v61 }
 0x1cd   : > { %v1267_v33 = vadd.f32 %v1266_v13, %v3686_v54  ;;  %v1108_v21 = vadd.f32 %v1107_v32, %v3689_v59  ;;  %v1268_v36 = vpop.f32.mrb[57].mxu1  ;;  %1979 = vmatmul.mubr.f32.gmra.mrb[118].mxu1 %v1261_v22 }
 0x1ce   : > { %v1269_v40 = vadd.f32 %v1268_v36, %v3697_v62 }
 0x1cf   : > { %v1111_v6 = vpop.f32.mrb[58].mxu0  ;;  %1838 = vmatprep.mubr.f32.mxu0 %v1108_v21 }
 0x1d0   : > { %v1272_v41 = vpop.f32.mrb[58].mxu1  ;;  %1983 = vmatprep.mubr.f32.mxu1 %v1269_v40  ;;  %v1113_v43 = vpop.f32.mrb[59].mxu0  ;;  %1839 = vmatmul.mubr.f32.gmra.mrb[120].mxu0 %v1106_v38  ;;  %v1112_v50 = vadd.f32 %v1111_v6, %v3694_v61 }
 0x1d1   : > { %v1273_v14 = vadd.f32 %v1272_v41, %v3686_v54  ;;  %v1114_v44 = vadd.f32 %v1113_v43, %v3689_v59  ;;  %v1274_v48 = vpop.f32.mrb[59].mxu1  ;;  %1984 = vmatmul.mubr.f32.gmra.mrb[120].mxu1 %v1267_v33 }
 0x1d2   : > { %v1275_v28 = vadd.f32 %v1274_v48, %v3697_v62 }
 0x1d3   : > { %v1117_v51 = vpop.f32.mrb[60].mxu0  ;;  %1843 = vmatprep.mubr.f32.mxu0 %v1114_v44 }
 0x1d4   : > { %v1278_v52 = vpop.f32.mrb[60].mxu1  ;;  %1988 = vmatprep.mubr.f32.mxu1 %v1275_v28  ;;  %v1119_v35 = vpop.f32.mrb[61].mxu0  ;;  %1844 = vmatmul.mubr.f32.gmra.mrb[122].mxu0 %v1112_v50  ;;  %v1118_v47 = vadd.f32 %v1117_v51, %v3694_v61 }
 0x1d5   : > { %v1279_v53 = vadd.f32 %v1278_v52, %v3686_v54  ;;  %v1120_v23 = vadd.f32 %v1119_v35, %v3689_v59  ;;  %v1280_v31 = vpop.f32.mrb[61].mxu1  ;;  %1989 = vmatmul.mubr.f32.gmra.mrb[122].mxu1 %v1273_v14 }
 0x1d6   : > { %v1281_v60 = vadd.f32 %v1280_v31, %v3697_v62 }
 0x1d7   : > { %v1123_v37 = vpop.f32.mrb[62].mxu0  ;;  %1848 = vmatprep.mubr.f32.mxu0 %v1120_v23 }
 0x1d8   : > { %v1284_v46 = vpop.f32.mrb[62].mxu1  ;;  %1993 = vmatprep.mubr.f32.mxu1 %v1281_v60  ;;  %v1125_v1 = vpop.f32.mrb[63].mxu0  ;;  %1849 = vmatmul.mubr.f32.gmra.mrb[124].mxu0 %v1118_v47  ;;  %v1124_v57 = vadd.f32 %v1123_v37, %v3694_v61  ;;  %v2007_v61 = vld [vmem:[%s3913_s5 + $0x18] sm:$0xff] }
 0x1d9   : > { %v1285_v3 = vadd.f32 %v1284_v46, %v3686_v54  ;;  %v1126_v39 = vadd.f32 %v1125_v1, %v3689_v59  ;;  %v1286_v55 = vpop.f32.mrb[63].mxu1  ;;  %1994 = vmatmul.mubr.f32.gmra.mrb[124].mxu1 %v1279_v53  ;;  %v2005_v54 = vld [vmem:[%s3913_s5 + $0x8] sm:$0xff]  ;;  %v2006_v59 = vld [vmem:[%s3913_s5 + $0x10] sm:$0xff] }
 0x1da   : > { %v1287_v2 = vadd.f32 %v1286_v55, %v3697_v62  ;;  %v3077_v8 = vpack.c.bf16 %v2005_v54, %v2004_v0  ;;  %v3081_v62 = vpack.c.bf16 %v2007_v61, %v2006_v59 }
 0x1db   : > { %1853 = vmatprep.mubr.f32.mxu0 %v1126_v39 }
 0x1dc   : > { %1998 = vmatprep.mubr.f32.mxu1 %v1287_v2  ;;  %1854 = vmatmul.mubr.f32.gmra.mrb[126].mxu0 %v1124_v57 }
 0x1dd   : > { %1999 = vmatmul.mubr.f32.gmra.mrb[126].mxu1 %v1285_v3  ;;  %3078 = vmatprep.subr.bf16.mxu0 %v3077_v8 }
 0x1de   : > { %3109 = vmatprep.subr.bf16.mxu1 %v3077_v8  ;;  %3080 = vmatpush3.bf16.msra.mxu0 %v3077_v8 }
 0x1df   : > { %3117 = vmatpush3.bf16.msra.mxu1 %v3077_v8  ;;  %3082 = vmatprep.subr.bf16.mxu0 %v3081_v62 }
 0x1e0   : > { %3110 = vmatprep.subr.bf16.mxu1 %v3081_v62 }
 0x1e2   : > { %3084 = vmatpush3.bf16.msra.mxu0 %v3081_v62 }
 0x1e3   : > { %3118 = vmatpush3.bf16.msra.mxu1 %v3081_v62  ;;  %3086 = vmatprep.subr.bf16.mxu0 %v3085_v11 }
 0x1e4   : > { %3111 = vmatprep.subr.bf16.mxu1 %v3085_v11 }
 0x1e6   : > { %3088 = vmatpush3.bf16.msra.mxu0 %v3085_v11 }
 0x1e7   : > { %3119 = vmatpush3.bf16.msra.mxu1 %v3085_v11  ;;  %3090 = vmatprep.subr.bf16.mxu0 %v3089_v45 }
 0x1e8   : > { %3112 = vmatprep.subr.bf16.mxu1 %v3089_v45 }
 0x1ea   : > { %3092 = vmatpush3.bf16.msra.mxu0 %v3089_v45 }
 0x1eb   : > { %3120 = vmatpush3.bf16.msra.mxu1 %v3089_v45  ;;  %3094 = vmatprep.subr.bf16.mxu0 %v3093_v17 }
 0x1ec   : > { %3113 = vmatprep.subr.bf16.mxu1 %v3093_v17 }
 0x1ee   : > { %3096 = vmatpush3.bf16.msra.mxu0 %v3093_v17 }
 0x1ef   : > { %3121 = vmatpush3.bf16.msra.mxu1 %v3093_v17  ;;  %3098 = vmatprep.subr.bf16.mxu0 %v3097_v5 }
 0x1f0   : > { %3114 = vmatprep.subr.bf16.mxu1 %v3097_v5 }
 0x1f2   : > { %3100 = vmatpush3.bf16.msra.mxu0 %v3097_v5 }
 0x1f3   : > { %3122 = vmatpush3.bf16.msra.mxu1 %v3097_v5  ;;  %3102 = vmatprep.subr.bf16.mxu0 %v3101_v9 }
 0x1f4   : > { %3115 = vmatprep.subr.bf16.mxu1 %v3101_v9 }
 0x1f6   : > { %3104 = vmatpush3.bf16.msra.mxu0 %v3101_v9 }
 0x1f7   : > { %3123 = vmatpush3.bf16.msra.mxu1 %v3101_v9  ;;  %3106 = vmatprep.subr.bf16.mxu0 %v3105_v15 }
 0x1f8   : > { %3116 = vmatprep.subr.bf16.mxu1 %v3105_v15 }
 0x1fa   : > { %3108 = vmatpush3.bf16.msra.mxu0 %v3105_v15 }
 0x1fb   : > { %3124 = vmatpush3.bf16.msra.mxu1 %v3105_v15 }
 0x233   : > { %v2317_v16 = vpop.f32.mrb[64].mxu0 }
 0x234   : > { %v2397_v19 = vpop.f32.mrb[64].mxu1  ;;  %v2318_v22 = vpop.f32.mrb[65].mxu0 }
 0x235   : > { %v2319_v56 = vadd.f32 %v2318_v22, %v2317_v16  ;;  %v2398_v25 = vpop.f32.mrb[65].mxu1 }
 0x236   : > { %v2399_v26 = vadd.f32 %v2398_v25, %v2397_v19 }
 0x237   : > { %v1491_v63 = vadd.f32 %v2319_v56, %v3814_v20  ;;  %v2320_v29 = vpop.f32.mrb[66].mxu0 }
 0x238   : > { %v2400_v13 = vpop.f32.mrb[66].mxu1  ;;  %v2321_v32 = vpop.f32.mrb[67].mxu0 }
 0x239   : > { %v3817_v33 = vadd.f32 %v2399_v26, %v1491_v63  ;;  %v2322_v21 = vadd.f32 %v2321_v32, %v2320_v29  ;;  %v2401_v36 = vpop.f32.mrb[67].mxu1 }
 0x23a   : > { %v2402_v38 = vadd.f32 %v2401_v36, %v2400_v13 }
 0x23b   : > { %v1496_v40 = vadd.f32 %v2322_v21, %v3814_v20  ;;  %v2323_v6 = vpop.f32.mrb[68].mxu0 }
 0x23c   : > { %v2403_v41 = vpop.f32.mrb[68].mxu1  ;;  %v2324_v43 = vpop.f32.mrb[69].mxu0 }
 0x23d   : > { %v3820_v14 = vadd.f32 %v2402_v38, %v1496_v40  ;;  %v2325_v44 = vadd.f32 %v2324_v43, %v2323_v6  ;;  %v2404_v48 = vpop.f32.mrb[69].mxu1 }
 0x23e   : > { %v2405_v50 = vadd.f32 %v2404_v48, %v2403_v41 }
 0x23f   : > { %v1501_v28 = vadd.f32 %v2325_v44, %v3814_v20  ;;  %v2326_v51 = vpop.f32.mrb[70].mxu0 }
 0x240   : > { %v2406_v52 = vpop.f32.mrb[70].mxu1  ;;  %v2327_v35 = vpop.f32.mrb[71].mxu0 }
 0x241   : > { %v3823_v53 = vadd.f32 %v2405_v50, %v1501_v28  ;;  %v2328_v23 = vadd.f32 %v2327_v35, %v2326_v51  ;;  %v2407_v31 = vpop.f32.mrb[71].mxu1 }
 0x242   : > { %v2408_v47 = vadd.f32 %v2407_v31, %v2406_v52 }
 0x243   : > { %v1506_v60 = vadd.f32 %v2328_v23, %v3814_v20  ;;  %v2329_v37 = vpop.f32.mrb[72].mxu0 }
 0x244   : > { %v2409_v46 = vpop.f32.mrb[72].mxu1  ;;  %v2330_v1 = vpop.f32.mrb[73].mxu0 }
 0x245   : > { %v3826_v3 = vadd.f32 %v2408_v47, %v1506_v60  ;;  %v2331_v39 = vadd.f32 %v2330_v1, %v2329_v37  ;;  %v2410_v55 = vpop.f32.mrb[73].mxu1 }
 0x246   : > { %v2411_v57 = vadd.f32 %v2410_v55, %v2409_v46 }
 0x247   : > { %v1511_v2 = vadd.f32 %v2331_v39, %v3814_v20  ;;  %v2332_v0 = vpop.f32.mrb[74].mxu0 }
 0x248   : > { %v2412_v54 = vpop.f32.mrb[74].mxu1  ;;  %v2333_v8 = vpop.f32.mrb[75].mxu0 }
 0x249   : > { %v3829_v59 = vadd.f32 %v2411_v57, %v1511_v2  ;;  %v2334_v61 = vadd.f32 %v2333_v8, %v2332_v0  ;;  %v2413_v62 = vpop.f32.mrb[75].mxu1 }
 0x24a   : > { %v2414_v18 = vadd.f32 %v2413_v62, %v2412_v54 }
 0x24b   : > { %v1516_v27 = vadd.f32 %v2334_v61, %v3814_v20  ;;  %v2335_v11 = vpop.f32.mrb[76].mxu0 }
 0x24c   : > { %v2415_v24 = vpop.f32.mrb[76].mxu1  ;;  %v2336_v34 = vpop.f32.mrb[77].mxu0 }
 0x24d   : > { %v3832_v45 = vadd.f32 %v2414_v18, %v1516_v27  ;;  %v2337_v58 = vadd.f32 %v2336_v34, %v2335_v11  ;;  %v2416_v4 = vpop.f32.mrb[77].mxu1 }
 0x24e   : > { %v2417_v17 = vadd.f32 %v2416_v4, %v2415_v24 }
 0x24f   : > { %v1521_v30 = vadd.f32 %v2337_v58, %v3814_v20  ;;  %v2338_v42 = vpop.f32.mrb[78].mxu0 }
 0x250   : > { %v2418_v5 = vpop.f32.mrb[78].mxu1  ;;  %v2339_v7 = vpop.f32.mrb[79].mxu0 }
 0x251   : > { %v3835_v49 = vadd.f32 %v2417_v17, %v1521_v30  ;;  %v2340_v9 = vadd.f32 %v2339_v7, %v2338_v42  ;;  %v2419_v10 = vpop.f32.mrb[79].mxu1 }
 0x252   : > { %v2420_v12 = vadd.f32 %v2419_v10, %v2418_v5 }
 0x253   : > { %v1526_v15 = vadd.f32 %v2340_v9, %v3814_v20  ;;  %v2341_v16 = vpop.f32.mrb[80].mxu0 }
 0x254   : > { %v2421_v19 = vpop.f32.mrb[80].mxu1  ;;  %v2342_v22 = vpop.f32.mrb[81].mxu0 }
 0x255   : > { %v3838_v56 = vadd.f32 %v2420_v12, %v1526_v15  ;;  %v2343_v25 = vadd.f32 %v2342_v22, %v2341_v16  ;;  %v2422_v26 = vpop.f32.mrb[81].mxu1 }
 0x256   : > { %v2423_v63 = vadd.f32 %v2422_v26, %v2421_v19 }
 0x257   : > { %v1531_v29 = vadd.f32 %v2343_v25, %v3814_v20  ;;  %v2344_v13 = vpop.f32.mrb[82].mxu0 }
 0x258   : > { %v2424_v32 = vpop.f32.mrb[82].mxu1  ;;  %v2345_v21 = vpop.f32.mrb[83].mxu0 }
 0x259   : > { %v3841_v36 = vadd.f32 %v2423_v63, %v1531_v29  ;;  %v2346_v38 = vadd.f32 %v2345_v21, %v2344_v13  ;;  %v2425_v40 = vpop.f32.mrb[83].mxu1 }
 0x25a   : > { %v2426_v6 = vadd.f32 %v2425_v40, %v2424_v32 }
 0x25b   : > { %v1536_v41 = vadd.f32 %v2346_v38, %v3814_v20  ;;  %v2347_v43 = vpop.f32.mrb[84].mxu0 }
 0x25c   : > { %v2427_v44 = vpop.f32.mrb[84].mxu1  ;;  %v2348_v48 = vpop.f32.mrb[85].mxu0 }
 0x25d   : > { %v3844_v50 = vadd.f32 %v2426_v6, %v1536_v41  ;;  %v2349_v28 = vadd.f32 %v2348_v48, %v2347_v43  ;;  %v2428_v51 = vpop.f32.mrb[85].mxu1 }
 0x25e   : > { %v2429_v52 = vadd.f32 %v2428_v51, %v2427_v44 }
 0x25f   : > { %v1541_v35 = vadd.f32 %v2349_v28, %v3814_v20  ;;  %v2350_v23 = vpop.f32.mrb[86].mxu0 }
 0x260   : > { %v2430_v31 = vpop.f32.mrb[86].mxu1  ;;  %v2351_v47 = vpop.f32.mrb[87].mxu0 }
 0x261   : > { %v3847_v60 = vadd.f32 %v2429_v52, %v1541_v35  ;;  %v2352_v37 = vadd.f32 %v2351_v47, %v2350_v23  ;;  %v2431_v46 = vpop.f32.mrb[87].mxu1 }
 0x262   : > { %v2432_v1 = vadd.f32 %v2431_v46, %v2430_v31 }
 0x263   : > { %v1546_v39 = vadd.f32 %v2352_v37, %v3814_v20  ;;  %v2353_v55 = vpop.f32.mrb[88].mxu0 }
 0x264   : > { %v2433_v57 = vpop.f32.mrb[88].mxu1  ;;  %v2354_v2 = vpop.f32.mrb[89].mxu0 }
 0x265   : > { %v3850_v0 = vadd.f32 %v2432_v1, %v1546_v39  ;;  %v2355_v54 = vadd.f32 %v2354_v2, %v2353_v55  ;;  %v2434_v8 = vpop.f32.mrb[89].mxu1 }
 0x266   : > { %v2435_v61 = vadd.f32 %v2434_v8, %v2433_v57 }
 0x267   : > { %v1551_v62 = vadd.f32 %v2355_v54, %v3814_v20  ;;  %v2356_v18 = vpop.f32.mrb[90].mxu0 }
 0x268   : > { %v2436_v27 = vpop.f32.mrb[90].mxu1  ;;  %v2357_v11 = vpop.f32.mrb[91].mxu0 }
 0x269   : > { %v3853_v24 = vadd.f32 %v2435_v61, %v1551_v62  ;;  %v2358_v34 = vadd.f32 %v2357_v11, %v2356_v18  ;;  %v2437_v58 = vpop.f32.mrb[91].mxu1 }
 0x26a   : > { %v2438_v4 = vadd.f32 %v2437_v58, %v2436_v27 }
 0x26b   : > { %v1556_v17 = vadd.f32 %v2358_v34, %v3814_v20  ;;  %v2359_v30 = vpop.f32.mrb[92].mxu0 }
 0x26c   : > { %v2439_v42 = vpop.f32.mrb[92].mxu1  ;;  %v2360_v5 = vpop.f32.mrb[93].mxu0 }
 0x26d   : > { %v3856_v7 = vadd.f32 %v2438_v4, %v1556_v17  ;;  %v2361_v9 = vadd.f32 %v2360_v5, %v2359_v30  ;;  %v2440_v10 = vpop.f32.mrb[93].mxu1 }
 0x26e   : > { %v2441_v12 = vadd.f32 %v2440_v10, %v2439_v42 }
 0x26f   : > { %v1561_v15 = vadd.f32 %v2361_v9, %v3814_v20  ;;  %v2362_v16 = vpop.f32.mrb[94].mxu0 }
 0x270   : > { %v2442_v19 = vpop.f32.mrb[94].mxu1  ;;  %v2363_v22 = vpop.f32.mrb[95].mxu0 }
 0x271   : > { %v3859_v25 = vadd.f32 %v2441_v12, %v1561_v15  ;;  %v2364_v26 = vadd.f32 %v2363_v22, %v2362_v16  ;;  %v2443_v63 = vpop.f32.mrb[95].mxu1 }
 0x272   : > { %v2444_v29 = vadd.f32 %v2443_v63, %v2442_v19 }
 0x273   : > { %v1566_v13 = vadd.f32 %v2364_v26, %v3814_v20  ;;  %v2477_v32 = vpop.f32.mrb[96].mxu0 }
 0x274   : > { %v2557_v21 = vpop.f32.mrb[96].mxu1  ;;  %v2478_v38 = vpop.f32.mrb[97].mxu0 }
 0x275   : > { %v3862_v40 = vadd.f32 %v2444_v29, %v1566_v13  ;;  %v2479_v6 = vadd.f32 %v2478_v38, %v2477_v32  ;;  %v2558_v41 = vpop.f32.mrb[97].mxu1 }
 0x276   : > { %v2559_v43 = vadd.f32 %v2558_v41, %v2557_v21 }
 0x277   : > { %v1781_v44 = vadd.f32 %v2479_v6, %v3817_v33  ;;  %v2480_v48 = vpop.f32.mrb[98].mxu0 }
 0x278   : > { %v2560_v28 = vpop.f32.mrb[98].mxu1  ;;  %v2481_v51 = vpop.f32.mrb[99].mxu0 }
 0x279   : > { %v1926_v52 = vadd.f32 %v2559_v43, %v1781_v44  ;;  %v2482_v35 = vadd.f32 %v2481_v51, %v2480_v48  ;;  %v2561_v23 = vpop.f32.mrb[99].mxu1 }
 0x27a   : > { %v2562_v31 = vadd.f32 %v2561_v23, %v2560_v28 }
 0x27b   : > { %v1786_v47 = vadd.f32 %v2482_v35, %v3820_v14  ;;  %v2483_v20 = vpop.f32.mrb[100].mxu0  ;;  %2669 = vmatprep.mubr.f32.mxu0 %v1926_v52 }
 0x27c   : > { %v2563_v37 = vpop.f32.mrb[100].mxu1  ;;  %v2484_v46 = vpop.f32.mrb[101].mxu0 }
 0x27d   : > { %v1931_v1 = vadd.f32 %v2562_v31, %v1786_v47  ;;  %v2485_v39 = vadd.f32 %v2484_v46, %v2483_v20  ;;  %v2564_v55 = vpop.f32.mrb[101].mxu1 }
 0x27e   : > { %v2565_v57 = vadd.f32 %v2564_v55, %v2563_v37 }
 0x27f   : > { %v1791_v2 = vadd.f32 %v2485_v39, %v3823_v53  ;;  %v2486_v33 = vpop.f32.mrb[102].mxu0  ;;  %2670 = vmatmul.mubr.f32.vlgmr.msra.gmra.mrb[128].mxu0 %v1931_v1 }
 0x280   : > { %v2566_v54 = vpop.f32.mrb[102].mxu1  ;;  %v2487_v8 = vpop.f32.mrb[103].mxu0 }
 0x281   : > { %v1936_v61 = vadd.f32 %v2565_v57, %v1791_v2  ;;  %v2488_v62 = vadd.f32 %v2487_v8, %v2486_v33  ;;  %v2567_v18 = vpop.f32.mrb[103].mxu1 }
 0x282   : > { %v2568_v27 = vadd.f32 %v2567_v18, %v2566_v54 }
 0x283   : > { %v1796_v14 = vadd.f32 %v2488_v62, %v3826_v3  ;;  %v2489_v11 = vpop.f32.mrb[104].mxu0  ;;  %2672 = vmatprep.mubr.f32.mxu0 %v1936_v61 }
 0x284   : > { %v2569_v34 = vpop.f32.mrb[104].mxu1  ;;  %v2490_v58 = vpop.f32.mrb[105].mxu0 }
 0x285   : > { %v1941_v4 = vadd.f32 %v2568_v27, %v1796_v14  ;;  %v2491_v17 = vadd.f32 %v2490_v58, %v2489_v11  ;;  %v2570_v30 = vpop.f32.mrb[105].mxu1 }
 0x286   : > { %v2571_v42 = vadd.f32 %v2570_v30, %v2569_v34 }
 0x287   : > { %v1801_v53 = vadd.f32 %v2491_v17, %v3829_v59  ;;  %v2492_v5 = vpop.f32.mrb[106].mxu0  ;;  %2673 = vmatmul.mubr.f32.gmra.mrb[130].mxu0 %v1941_v4 }
 0x288   : > { %v2572_v9 = vpop.f32.mrb[106].mxu1  ;;  %v2493_v10 = vpop.f32.mrb[107].mxu0 }
 0x289   : > { %v1946_v12 = vadd.f32 %v2571_v42, %v1801_v53  ;;  %v2494_v15 = vadd.f32 %v2493_v10, %v2492_v5  ;;  %v2573_v16 = vpop.f32.mrb[107].mxu1 }
 0x28a   : > { %v2574_v19 = vadd.f32 %v2573_v16, %v2572_v9 }
 0x28b   : > { %v1806_v3 = vadd.f32 %v2494_v15, %v3832_v45  ;;  %v2495_v22 = vpop.f32.mrb[108].mxu0  ;;  %2675 = vmatprep.mubr.f32.mxu0 %v1946_v12 }
 0x28c   : > { %v2575_v26 = vpop.f32.mrb[108].mxu1  ;;  %v2496_v63 = vpop.f32.mrb[109].mxu0 }
 0x28d   : > { %v1951_v29 = vadd.f32 %v2574_v19, %v1806_v3  ;;  %v2497_v13 = vadd.f32 %v2496_v63, %v2495_v22  ;;  %v2576_v32 = vpop.f32.mrb[109].mxu1 }
 0x28e   : > { %v2577_v21 = vadd.f32 %v2576_v32, %v2575_v26 }
 0x28f   : > { %v1811_v59 = vadd.f32 %v2497_v13, %v3835_v49  ;;  %v2498_v38 = vpop.f32.mrb[110].mxu0  ;;  %2676 = vmatmul.mubr.f32.gmra.mrb[132].mxu0 %v1951_v29 }
 0x290   : > { %v2578_v6 = vpop.f32.mrb[110].mxu1  ;;  %v2499_v41 = vpop.f32.mrb[111].mxu0 }
 0x291   : > { %v1956_v43 = vadd.f32 %v2577_v21, %v1811_v59  ;;  %v2500_v44 = vadd.f32 %v2499_v41, %v2498_v38  ;;  %v2579_v48 = vpop.f32.mrb[111].mxu1 }
 0x292   : > { %v2580_v28 = vadd.f32 %v2579_v48, %v2578_v6 }
 0x293   : > { %v1816_v45 = vadd.f32 %v2500_v44, %v3838_v56  ;;  %v2501_v51 = vpop.f32.mrb[112].mxu0  ;;  %2678 = vmatprep.mubr.f32.mxu0 %v1956_v43 }
 0x294   : > { %v2581_v52 = vpop.f32.mrb[112].mxu1  ;;  %v2502_v35 = vpop.f32.mrb[113].mxu0 }
 0x295   : > { %v1961_v23 = vadd.f32 %v2580_v28, %v1816_v45  ;;  %v2503_v31 = vadd.f32 %v2502_v35, %v2501_v51  ;;  %v2582_v47 = vpop.f32.mrb[113].mxu1 }
 0x296   : > { %v2583_v20 = vadd.f32 %v2582_v47, %v2581_v52 }
 0x297   : > { %v1821_v49 = vadd.f32 %v2503_v31, %v3841_v36  ;;  %v2504_v37 = vpop.f32.mrb[114].mxu0  ;;  %2679 = vmatmul.mubr.f32.gmra.mrb[134].mxu0 %v1961_v23  ;;  %v2281_v23 = vld [vmem:[%s3914_s6] ss:$0 sm:$0xff] }
 0x298   : > { %v2584_v46 = vpop.f32.mrb[114].mxu1  ;;  %v2505_v1 = vpop.f32.mrb[115].mxu0 }
 0x299   : > { %v1966_v39 = vadd.f32 %v2583_v20, %v1821_v49  ;;  %v2506_v55 = vadd.f32 %v2505_v1, %v2504_v37  ;;  %v2585_v57 = vpop.f32.mrb[115].mxu1 }
 0x29a   : > { %v2586_v2 = vadd.f32 %v2585_v57, %v2584_v46 }
 0x29b   : > { %v1826_v56 = vadd.f32 %v2506_v55, %v3844_v50  ;;  %v2507_v33 = vpop.f32.mrb[116].mxu0  ;;  %2681 = vmatprep.mubr.f32.mxu1 %v1966_v39 }
 0x29c   : > { %v2587_v54 = vpop.f32.mrb[116].mxu1  ;;  %v2508_v8 = vpop.f32.mrb[117].mxu0 }
 0x29d   : > { %v1971_v61 = vadd.f32 %v2586_v2, %v1826_v56  ;;  %v2509_v62 = vadd.f32 %v2508_v8, %v2507_v33  ;;  %v2588_v18 = vpop.f32.mrb[117].mxu1 }
 0x29e   : > { %v2589_v27 = vadd.f32 %v2588_v18, %v2587_v54 }
 0x29f   : > { %v1831_v36 = vadd.f32 %v2509_v62, %v3847_v60  ;;  %v2510_v14 = vpop.f32.mrb[118].mxu0  ;;  %2682 = vmatmul.mubr.f32.vlgmr.msra.gmra.mrb[128].mxu1 %v1971_v61 }
 0x2a0   : > { %v2590_v11 = vpop.f32.mrb[118].mxu1  ;;  %v2511_v34 = vpop.f32.mrb[119].mxu0 }
 0x2a1   : > { %v1976_v58 = vadd.f32 %v2589_v27, %v1831_v36  ;;  %v2512_v4 = vadd.f32 %v2511_v34, %v2510_v14  ;;  %v2591_v17 = vpop.f32.mrb[119].mxu1 }
 0x2a2   : > { %v2592_v30 = vadd.f32 %v2591_v17, %v2590_v11 }
 0x2a3   : > { %v1836_v50 = vadd.f32 %v2512_v4, %v3850_v0  ;;  %v2513_v42 = vpop.f32.mrb[120].mxu0  ;;  %2684 = vmatprep.mubr.f32.mxu1 %v1976_v58 }
 0x2a4   : > { %v2593_v53 = vpop.f32.mrb[120].mxu1  ;;  %v2514_v5 = vpop.f32.mrb[121].mxu0 }
 0x2a5   : > { %v1981_v9 = vadd.f32 %v2592_v30, %v1836_v50  ;;  %v2515_v10 = vadd.f32 %v2514_v5, %v2513_v42  ;;  %v2594_v12 = vpop.f32.mrb[121].mxu1 }
 0x2a6   : > { %v2595_v15 = vadd.f32 %v2594_v12, %v2593_v53 }
 0x2a7   : > { %v1841_v60 = vadd.f32 %v2515_v10, %v3853_v24  ;;  %v2516_v16 = vpop.f32.mrb[122].mxu0  ;;  %2685 = vmatmul.mubr.f32.gmra.mrb[130].mxu1 %v1981_v9 }
 0x2a8   : > { %v2596_v19 = vpop.f32.mrb[122].mxu1  ;;  %v2517_v3 = vpop.f32.mrb[123].mxu0 }
 0x2a9   : > { %v1986_v22 = vadd.f32 %v2595_v15, %v1841_v60  ;;  %v2518_v26 = vadd.f32 %v2517_v3, %v2516_v16  ;;  %v2597_v63 = vpop.f32.mrb[123].mxu1 }
 0x2aa   : > { %v2598_v29 = vadd.f32 %v2597_v63, %v2596_v19 }
 0x2ab   : > { %v1846_v0 = vadd.f32 %v2518_v26, %v3856_v7  ;;  %v2519_v13 = vpop.f32.mrb[124].mxu0  ;;  %2687 = vmatprep.mubr.f32.mxu1 %v1986_v22 }
 0x2ac   : > { %v2599_v32 = vpop.f32.mrb[124].mxu1  ;;  %v2520_v21 = vpop.f32.mrb[125].mxu0 }
 0x2ad   : > { %v1991_v59 = vadd.f32 %v2598_v29, %v1846_v0  ;;  %v2521_v38 = vadd.f32 %v2520_v21, %v2519_v13  ;;  %v2600_v6 = vpop.f32.mrb[125].mxu1 }
 0x2ae   : > { %v2601_v41 = vadd.f32 %v2600_v6, %v2599_v32 }
 0x2af   : > { %v1851_v24 = vadd.f32 %v2521_v38, %v3859_v25  ;;  %v2522_v43 = vpop.f32.mrb[126].mxu0  ;;  %2688 = vmatmul.mubr.f32.gmra.mrb[132].mxu1 %v1991_v59 }
 0x2b0   : > { %v2602_v44 = vpop.f32.mrb[126].mxu1  ;;  %v2523_v48 = vpop.f32.mrb[127].mxu0 }
 0x2b1   : > { %v1996_v28 = vadd.f32 %v2601_v41, %v1851_v24  ;;  %v2524_v45 = vadd.f32 %v2523_v48, %v2522_v43  ;;  %v2603_v51 = vpop.f32.mrb[127].mxu1 }
 0x2b2   : > { %v2604_v52 = vadd.f32 %v2603_v51, %v2602_v44 }
 0x2b3   : > { %v1856_v7 = vadd.f32 %v2524_v45, %v3862_v40  ;;  %2690 = vmatprep.mubr.f32.mxu1 %v1996_v28 }
 0x2b5   : > { %v2001_v35 = vadd.f32 %v2604_v52, %v1856_v7 }
 0x2b7   : > { %2691 = vmatmul.mubr.f32.gmra.mrb[134].mxu1 %v2001_v35 }
 0x352   : > { %v2671_v25 = vpop.f32.mrb[128].mxu0 }
 0x353   : > { %v2099_v40 = vadd.f32 %v2671_v25, %v2281_v23  ;;  %v2093_v31 = vpop.f32.mrb[129].mxu0 }
 0x354   : > { %v2094_v47 = vadd.f32 %v2281_v23, %v2093_v31 }
 0x355   : > { %2173 = vst [vmem:[%s3887_s9 + $0x8] sm:$0xff] %v2099_v40 }
 0x356   : > { %2172 = vst [vmem:[%s3887_s9] sm:$0xff] %v2094_v47 }
 0x35a   : > { %v2674_v20 = vpop.f32.mrb[130].mxu0 }
 0x35b   : > { %v2109_v49 = vadd.f32 %v2674_v20, %v2281_v23  ;;  %v2103_v37 = vpop.f32.mrb[131].mxu0 }
 0x35c   : > { %v2104_v46 = vadd.f32 %v2281_v23, %v2103_v37 }
 0x35d   : > { %2175 = vst [vmem:[%s3887_s9 + $0x18] sm:$0xff] %v2109_v49 }
 0x35e   : > { %2174 = vst [vmem:[%s3887_s9 + $0x10] sm:$0xff] %v2104_v46 }
 0x362   : > { %v2677_v1 = vpop.f32.mrb[132].mxu0 }
 0x363   : > { %v2119_v39 = vadd.f32 %v2677_v1, %v2281_v23  ;;  %v2113_v55 = vpop.f32.mrb[133].mxu0 }
 0x364   : > { %v2114_v57 = vadd.f32 %v2281_v23, %v2113_v55 }
 0x365   : > { %2177 = vst [vmem:[%s3887_s9 + $0x28] sm:$0xff] %v2119_v39 }
 0x366   : > { %2176 = vst [vmem:[%s3887_s9 + $0x20] sm:$0xff] %v2114_v57 }
 0x36a   : > { %v2680_v2 = vpop.f32.mrb[134].mxu0 }
 0x36b   : > { %v2129_v56 = vadd.f32 %v2680_v2, %v2281_v23  ;;  %v2123_v33 = vpop.f32.mrb[135].mxu0 }
 0x36c   : > { %v2124_v54 = vadd.f32 %v2281_v23, %v2123_v33 }
 0x36d   : > { %2179 = vst [vmem:[%s3887_s9 + $0x38] sm:$0xff] %v2129_v56 }
 0x36e   : > { %2178 = vst [vmem:[%s3887_s9 + $0x30] sm:$0xff] %v2124_v54 }
 0x372   : > { %v2683_v8 = vpop.f32.mrb[128].mxu1 }
 0x373   : > { %v2139_v61 = vadd.f32 %v2683_v8, %v2281_v23  ;;  %v2133_v62 = vpop.f32.mrb[129].mxu1 }
 0x374   : > { %v2134_v18 = vadd.f32 %v2281_v23, %v2133_v62 }
 0x375   : > { %2181 = vst [vmem:[%s3887_s9 + $0x48] sm:$0xff] %v2139_v61 }
 0x376   : > { %2180 = vst [vmem:[%s3887_s9 + $0x40] sm:$0xff] %v2134_v18 }
 0x37a   : > { %v2686_v27 = vpop.f32.mrb[130].mxu1 }
 0x37b   : > { %v2149_v36 = vadd.f32 %v2686_v27, %v2281_v23  ;;  %v2143_v14 = vpop.f32.mrb[131].mxu1 }
 0x37c   : > { %v2144_v11 = vadd.f32 %v2281_v23, %v2143_v14 }
 0x37d   : > { %2183 = vst [vmem:[%s3887_s9 + $0x58] sm:$0xff] %v2149_v36 }
 0x37e   : > { %2182 = vst [vmem:[%s3887_s9 + $0x50] sm:$0xff] %v2144_v11 }
 0x382   : > { %v2689_v34 = vpop.f32.mrb[132].mxu1 }
 0x383   : > { %v2159_v58 = vadd.f32 %v2689_v34, %v2281_v23  ;;  %v2153_v4 = vpop.f32.mrb[133].mxu1 }
 0x384   : > { %v2154_v17 = vadd.f32 %v2281_v23, %v2153_v4 }
 0x385   : > { %2185 = vst [vmem:[%s3887_s9 + $0x68] sm:$0xff] %v2159_v58 }
 0x386   : > { %2184 = vst [vmem:[%s3887_s9 + $0x60] sm:$0xff] %v2154_v17 }
 0x38a   : > { %v2692_v30 = vpop.f32.mrb[134].mxu1 }
 0x38b   : > { %v2169_v50 = vadd.f32 %v2692_v30, %v2281_v23  ;;  %v2163_v42 = vpop.f32.mrb[135].mxu1 }
 0x38c   : > { %v2164_v53 = vadd.f32 %v2281_v23, %v2163_v42 }
 0x38d   : > { %2187 = vst [vmem:[%s3887_s9 + $0x78] sm:$0xff] %v2169_v50 }
 0x38e   : > { %2186 = vst [vmem:[%s3887_s9 + $0x70] sm:$0xff] %v2164_v53 }
 0x38f PF: > { %s19_s24 = sadd.s32 1, %s3228_s24  }
 0x390   : > { %p16_p2 = scmp.ge.s32.totalorder %s19_s24, 4  }
 0x392   :  { %18 = sbr.rel (!%p16_p2) target bundleno = 2 (0x2), region = 87 }
 0x399   :  { %2210 = vsyncpa [#allocation3], 1 }
 0x39a   :  { %2212 = vsyncpa [#allocation3 + $0x1], 1 }
 0x39b   :  { %2213 = vsyncpa [#allocation5], 1 }

</bundles_post_ra>
